<compile_context>
chip_gen: v7x
topology: tpu7x:2x2x1
jax: 0.10.0
libtpu: 0.0.40
codegen_flags: <defaults>
</compile_context>

<pallas_src>
import math

import jax
import jax.numpy as jnp
from jax import lax
from jax.experimental import pallas as pl
from jax.experimental.pallas import tpu as pltpu

# --- small synthetic BERT config (stands in for bert-base-chinese) ---
VOCAB = 100
SEQ = 8
HIDDEN = 32
N_HEADS = 2
HEAD_DIM = HIDDEN // N_HEADS
FFN = 4 * HIDDEN
N_LAYERS = 2
BATCH = 2
LN_EPS = 1e-12
QKV_PAD = 128           # fused Q|K|V output width, zero-padded to a full lane group
HEAD_PAD = 128          # lane-dense packed classifier+regressor output width


# ----------------------------- in-kernel helpers -----------------------------
def _layernorm(x, gamma, beta):
    mu = jnp.mean(x, axis=-1, keepdims=True)
    var = jnp.mean((x - mu) ** 2, axis=-1, keepdims=True)
    return (x - mu) * jax.lax.rsqrt(var + LN_EPS) * gamma + beta


def _gelu(x):
    # tanh approximation of GELU (exact-erf GELU differs negligibly; synthetic weights)
    c = math.sqrt(2.0 / math.pi)
    return 0.5 * x * (1.0 + jnp.tanh(c * (x + 0.044715 * x * x * x)))


# ----------------------------- fused forward kernel --------------------------
def fused_forward_kernel(
        x0_ref, mask_ref, elng_ref, elnb_ref,          # pre-LN embeddings + additive mask
        wqkv_ref, bqkv_ref, wo_ref, bo_ref, ln_ref,    # per-layer attention params (stacked)
        w1_ref, b1_ref, w2_ref, b2_ref,                # per-layer FFN params (stacked)
        wp_ref, bp_ref, wh_ref, bh_ref,                # pooler + packed heads
        out_ref):                                      # (B, HEAD_PAD) lane-dense head output
    # ---- embedding LayerNorm (f32) seeds the activations ----
    x = _layernorm(x0_ref[...], elng_ref[...], elnb_ref[...])      # (B*S, H)
    mask = mask_ref[...]                                           # (B*S, B*S) additive
    scale = 1.0 / math.sqrt(HEAD_DIM)

    # ---- encoder layers, fully unrolled (all weights VMEM-resident) ----
    for l in range(N_LAYERS):
        x_b = x.astype(jnp.bfloat16)

        # fused QKV projection: one lane-dense (B*S, 128) matmul, slice q/k/v
        qkv = jnp.dot(x_b, wqkv_ref[l], preferred_element_type=jnp.float32) + bqkv_ref[l]
        q = qkv[:, 0:HIDDEN]
        k = qkv[:, HIDDEN:2 * HIDDEN]
        v = qkv[:, 2 * HIDDEN:3 * HIDDEN]

        # attention over all batches at once (cross-batch keys masked by `mask`);
        # per-head context is folded straight into the output projection.
        attn = jnp.zeros((BATCH * SEQ, HIDDEN), jnp.float32)
        for h in range(N_HEADS):
            cols = slice(h * HEAD_DIM, (h + 1) * HEAD_DIM)
            qh, kh, vh = q[:, cols], k[:, cols], v[:, cols]
            # contract last dims of both operands -> no explicit kh transpose
            s = lax.dot_general(qh, kh, (((1,), (1,)), ((), ())),
                                preferred_element_type=jnp.float32)
            s = s * scale + mask
            s = s - jnp.max(s, axis=-1, keepdims=True)
            p = jnp.exp(s)
            p = p * pl.reciprocal(jnp.sum(p, axis=-1, keepdims=True), approx=True)
            ctx = jnp.dot(p, vh, preferred_element_type=jnp.float32)        # (B*S, hd)
            wo_h = wo_ref[l, h * HEAD_DIM:(h + 1) * HEAD_DIM, :]            # (hd, H) bf16
            attn = attn + jnp.dot(ctx.astype(jnp.bfloat16), wo_h,
                                  preferred_element_type=jnp.float32)
        attn = attn + bo_ref[l]

        h1 = _layernorm(x + attn, ln_ref[l, 0], ln_ref[l, 1])
        ff = _gelu(jnp.dot(h1.astype(jnp.bfloat16), w1_ref[l],
                           preferred_element_type=jnp.float32) + b1_ref[l])
        ff = jnp.dot(ff.astype(jnp.bfloat16), w2_ref[l],
                     preferred_element_type=jnp.float32) + b2_ref[l]
        x = _layernorm(h1 + ff, ln_ref[l, 2], ln_ref[l, 3])

    # ---- pooler + packed classifier/regressor on the B CLS rows only ----
    cls = jnp.concatenate([x[b * SEQ:b * SEQ + 1, :] for b in range(BATCH)], axis=0)
    pooled = jnp.tanh(jnp.dot(cls.astype(jnp.bfloat16), wp_ref[...],
                              preferred_element_type=jnp.float32) + bp_ref[...])
    # dropout(p=0.3) is identity in eval mode.
    head = jnp.dot(pooled.astype(jnp.bfloat16), wh_ref[...],
                   preferred_element_type=jnp.float32) + bh_ref[...]       # (B, HEAD_PAD)
    out_ref[...] = head                                  # single unmasked lane-dense store


# ----------------------------- wrapper -----------------------------------------
def _vmem_spec():
    return pl.BlockSpec(memory_space=pltpu.MemorySpace.VMEM)


def multi_task_forward(input_ids, attention_mask, params):
    B, S = input_ids.shape
    ep = params["embed"]

    # TODO(synk): embedding table gather kept as plain-JAX glue (tiny, not the hot
    # path); its LayerNorm is fused into the Pallas kernel prologue.
    x0 = (ep["word"][input_ids] + ep["pos"][None, :S, :]
          + ep["type"][0][None, None, :]).astype(jnp.float32).reshape(B * S, HIDDEN)

    # (B*S, B*S) additive mask: -1e9 for padded keys and cross-batch pairs, else 0.
    batch_idx = jnp.arange(B * S, dtype=jnp.int32) // S
    same_batch = batch_idx[:, None] == batch_idx[None, :]
    key_valid = (attention_mask.reshape(-1) > 0)[None, :]
    mask2d = jnp.where(same_batch & key_valid, 0.0, -1e9).astype(jnp.float32)

    p = params
    args = (x0, mask2d, ep["ln_g"], ep["ln_b"],
            p["w_qkv"], p["b_qkv"], p["w_o"], p["b_o"], p["ln"],
            p["w_ffn1"], p["b_ffn1"], p["w_ffn2"], p["b_ffn2"],
            p["w_pool"], p["b_pool"], p["w_heads"], p["b_heads"])

    # NOTE(v7x): at production sizes re-introduce a layer grid axis ("arbitrary")
    # with per-layer weight BlockSpecs plus a leading "parallel" row-tile axis to
    # feed the second TensorCore; at this toy size everything fits resident and
    # per-step overhead would dominate.
    head_out = pl.pallas_call(
        fused_forward_kernel,
        out_shape=jax.ShapeDtypeStruct((B, HEAD_PAD), jnp.float32),
        in_specs=[_vmem_spec() for _ in args],
        out_specs=_vmem_spec(),
    )(*args)

    logits = head_out[:, :2]                   # classifier
    reg = head_out[:, 2]                       # regressor (squeezed)
    return logits, reg


# ----------------------------- params ------------------------------------------
def init_params(key):
    ks = iter(jax.random.split(key, 16))

    def w(shape, scale=0.02):
        return (scale * jax.random.normal(next(ks), shape)).astype(jnp.float32)

    embed = dict(
        word=w((VOCAB, HIDDEN)),
        pos=w((SEQ, HIDDEN)),
        type=w((2, HIDDEN)),
        ln_g=jnp.ones((1, HIDDEN), jnp.float32),
        ln_b=jnp.zeros((1, HIDDEN), jnp.float32),
    )

    # fused Q|K|V weight, zero-padded along lanes to 128 for an unmasked output
    wq = w((N_LAYERS, HIDDEN, HIDDEN))
    wk = w((N_LAYERS, HIDDEN, HIDDEN))
    wv = w((N_LAYERS, HIDDEN, HIDDEN))
    w_qkv = jnp.zeros((N_LAYERS, HIDDEN, QKV_PAD), jnp.float32)
    w_qkv = (w_qkv.at[:, :, 0:HIDDEN].set(wq)
                  .at[:, :, HIDDEN:2 * HIDDEN].set(wk)
                  .at[:, :, 2 * HIDDEN:3 * HIDDEN].set(wv)).astype(jnp.bfloat16)

    ones = jnp.ones((N_LAYERS, 1, 1, HIDDEN), jnp.float32)
    zeros = jnp.zeros((N_LAYERS, 1, 1, HIDDEN), jnp.float32)

    # classifier (H,2) and regressor (H,1) packed into one lane-dense (H,128) weight
    w_cls = w((HIDDEN, 2))
    w_reg = w((HIDDEN, 1))
    w_heads = jnp.zeros((HIDDEN, HEAD_PAD), jnp.float32)
    w_heads = (w_heads.at[:, 0:2].set(w_cls).at[:, 2:3].set(w_reg)).astype(jnp.bfloat16)

    return dict(
        embed=embed,
        w_qkv=w_qkv,                                             # (L, H, 128) bf16
        b_qkv=jnp.zeros((N_LAYERS, 1, QKV_PAD), jnp.float32),    # (L, 1, 128) f32
        w_o=w((N_LAYERS, HIDDEN, HIDDEN)).astype(jnp.bfloat16),  # (L, H, H)   bf16
        b_o=jnp.zeros((N_LAYERS, 1, HIDDEN), jnp.float32),
        ln=jnp.concatenate([ones, zeros, ones, zeros], axis=1),  # (L, 4, 1, H) [g1,b1,g2,b2]
        w_ffn1=w((N_LAYERS, HIDDEN, FFN)).astype(jnp.bfloat16),
        b_ffn1=jnp.zeros((N_LAYERS, 1, FFN), jnp.float32),
        w_ffn2=w((N_LAYERS, FFN, HIDDEN)).astype(jnp.bfloat16),
        b_ffn2=jnp.zeros((N_LAYERS, 1, HIDDEN), jnp.float32),
        w_pool=w((HIDDEN, HIDDEN)).astype(jnp.bfloat16),
        b_pool=jnp.zeros((1, HIDDEN), jnp.float32),
        w_heads=w_heads,                                         # (H, 128) bf16
        b_heads=jnp.zeros((1, HEAD_PAD), jnp.float32),
    )


# ----------------------------- main ---------------------------------------------
if __name__ == "__main__":
    root = jax.random.PRNGKey(0)
    pkey, ikey = jax.random.split(root)

    params = init_params(pkey)
    input_ids = jax.random.randint(ikey, (BATCH, SEQ), 0, VOCAB, dtype=jnp.int32)
    attention_mask = jnp.ones((BATCH, SEQ), dtype=jnp.int32).at[1, SEQ - 2:].set(0)

    logits, reg = jax.jit(multi_task_forward)(input_ids, attention_mask, params)
    jax.block_until_ready((logits, reg))

    assert logits.shape == (BATCH, 2) and logits.dtype == jnp.float32
    assert reg.shape == (BATCH,) and reg.dtype == jnp.float32
    print("KERNEL_OK")
</pallas_src>

<mosaic_0001>
module attributes {stable_mosaic.version = 11 : i64} {
  func.func @fused_forward_kernel(%arg0: memref<16x32xf32, #tpu.memory_space<vmem>>, %arg1: memref<16x16xf32, #tpu.memory_space<vmem>>, %arg2: memref<1x32xf32, #tpu.memory_space<vmem>>, %arg3: memref<1x32xf32, #tpu.memory_space<vmem>>, %arg4: memref<2x32x128xbf16, #tpu.memory_space<vmem>>, %arg5: memref<2x1x128xf32, #tpu.memory_space<vmem>>, %arg6: memref<2x32x32xbf16, #tpu.memory_space<vmem>>, %arg7: memref<2x1x32xf32, #tpu.memory_space<vmem>>, %arg8: memref<2x4x1x32xf32, #tpu.memory_space<vmem>>, %arg9: memref<2x32x128xbf16, #tpu.memory_space<vmem>>, %arg10: memref<2x1x128xf32, #tpu.memory_space<vmem>>, %arg11: memref<2x128x32xbf16, #tpu.memory_space<vmem>>, %arg12: memref<2x1x32xf32, #tpu.memory_space<vmem>>, %arg13: memref<32x32xbf16, #tpu.memory_space<vmem>>, %arg14: memref<1x32xf32, #tpu.memory_space<vmem>>, %arg15: memref<32x128xbf16, #tpu.memory_space<vmem>>, %arg16: memref<1x128xf32, #tpu.memory_space<vmem>>, %arg17: memref<2x128xf32, #tpu.memory_space<vmem>>) attributes {dimension_semantics = [], scalar_prefetch = 0 : i64, scratch_operands = 0 : i64, tpu.core_type = #tpu.core_type<tc>} {
    %c0 = arith.constant 0 : index
    %c0_0 = arith.constant 0 : index
    %0 = vector.load %arg0[%c0, %c0_0] : memref<16x32xf32, #tpu.memory_space<vmem>>, vector<16x32xf32>
    %c0_1 = arith.constant 0 : index
    %c0_2 = arith.constant 0 : index
    %1 = vector.load %arg2[%c0_1, %c0_2] : memref<1x32xf32, #tpu.memory_space<vmem>>, vector<1x32xf32>
    %c0_3 = arith.constant 0 : index
    %c0_4 = arith.constant 0 : index
    %2 = vector.load %arg3[%c0_3, %c0_4] : memref<1x32xf32, #tpu.memory_space<vmem>>, vector<1x32xf32>
    %cst = arith.constant dense<0.000000e+00> : vector<16xf32>
    %3 = vector.multi_reduction <add>, %0, %cst [1] : vector<16x32xf32> to vector<16xf32>
    %4 = vector.shape_cast %3 : vector<16xf32> to vector<16x1xf32>
    %cst_5 = arith.constant 3.200000e+01 : f32
    %5 = vector.broadcast %cst_5 : f32 to vector<16x1xf32>
    %6 = arith.divf %4, %5 : vector<16x1xf32>
    %7 = vector.broadcast %6 : vector<16x1xf32> to vector<16x32xf32>
    %8 = arith.subf %0, %7 : vector<16x32xf32>
    %9 = arith.mulf %8, %8 : vector<16x32xf32>
    %cst_6 = arith.constant dense<0.000000e+00> : vector<16xf32>
    %10 = vector.multi_reduction <add>, %9, %cst_6 [1] : vector<16x32xf32> to vector<16xf32>
    %11 = vector.shape_cast %10 : vector<16xf32> to vector<16x1xf32>
    %cst_7 = arith.constant 3.200000e+01 : f32
    %12 = vector.broadcast %cst_7 : f32 to vector<16x1xf32>
    %13 = arith.divf %11, %12 : vector<16x1xf32>
    %14 = vector.broadcast %6 : vector<16x1xf32> to vector<16x32xf32>
    %15 = arith.subf %0, %14 : vector<16x32xf32>
    %cst_8 = arith.constant 9.99999996E-13 : f32
    %16 = vector.broadcast %cst_8 : f32 to vector<16x1xf32>
    %17 = arith.addf %13, %16 : vector<16x1xf32>
    %18 = math.rsqrt %17 : vector<16x1xf32>
    %19 = vector.broadcast %18 : vector<16x1xf32> to vector<16x32xf32>
    %20 = arith.mulf %15, %19 : vector<16x32xf32>
    %21 = vector.broadcast %1 : vector<1x32xf32> to vector<16x32xf32>
    %22 = arith.mulf %20, %21 : vector<16x32xf32>
    %23 = vector.broadcast %2 : vector<1x32xf32> to vector<16x32xf32>
    %24 = arith.addf %22, %23 : vector<16x32xf32>
    %c0_9 = arith.constant 0 : index
    %c0_10 = arith.constant 0 : index
    %25 = vector.load %arg1[%c0_9, %c0_10] : memref<16x16xf32, #tpu.memory_space<vmem>>, vector<16x16xf32>
    %26 = arith.truncf %24 : vector<16x32xf32> to vector<16x32xbf16>
    %c0_11 = arith.constant 0 : index
    %c0_12 = arith.constant 0 : index
    %c0_13 = arith.constant 0 : index
    %27 = vector.load %arg4[%c0_11, %c0_12, %c0_13] : memref<2x32x128xbf16, #tpu.memory_space<vmem>>, vector<1x32x128xbf16>
    %28 = vector.shape_cast %27 : vector<1x32x128xbf16> to vector<32x128xbf16>
    %cst_14 = arith.constant dense<0.000000e+00> : vector<16x128xf32>
    %29 = tpu.matmul %26, %28, %cst_14 {dimension_numbers = #tpu.dot_dimension_numbers<[1], [0], [0], [1], [0, 0, 1, 1], [], []>} : vector<16x32xbf16>, vector<32x128xbf16>, vector<16x128xf32> -> vector<16x128xf32>
    %c0_15 = arith.constant 0 : index
    %c0_16 = arith.constant 0 : index
    %c0_17 = arith.constant 0 : index
    %30 = vector.load %arg5[%c0_15, %c0_16, %c0_17] : memref<2x1x128xf32, #tpu.memory_space<vmem>>, vector<1x1x128xf32>
    %31 = vector.shape_cast %30 : vector<1x1x128xf32> to vector<1x128xf32>
    %32 = vector.broadcast %31 : vector<1x128xf32> to vector<16x128xf32>
    %33 = arith.addf %29, %32 : vector<16x128xf32>
    %34 = vector.extract_strided_slice %33 {offsets = [0, 0], sizes = [16, 32], strides = [1, 1]} : vector<16x128xf32> to vector<16x32xf32>
    %35 = vector.extract_strided_slice %33 {offsets = [0, 32], sizes = [16, 32], strides = [1, 1]} : vector<16x128xf32> to vector<16x32xf32>
    %36 = vector.extract_strided_slice %33 {offsets = [0, 64], sizes = [16, 32], strides = [1, 1]} : vector<16x128xf32> to vector<16x32xf32>
    %cst_18 = arith.constant 0.000000e+00 : f32
    %37 = vector.broadcast %cst_18 : f32 to vector<16x32xf32>
    %38 = vector.extract_strided_slice %34 {offsets = [0, 0], sizes = [16, 16], strides = [1, 1]} : vector<16x32xf32> to vector<16x16xf32>
    %39 = vector.extract_strided_slice %35 {offsets = [0, 0], sizes = [16, 16], strides = [1, 1]} : vector<16x32xf32> to vector<16x16xf32>
    %40 = vector.extract_strided_slice %36 {offsets = [0, 0], sizes = [16, 16], strides = [1, 1]} : vector<16x32xf32> to vector<16x16xf32>
    %cst_19 = arith.constant dense<0.000000e+00> : vector<16x16xf32>
    %41 = tpu.matmul %38, %39, %cst_19 {dimension_numbers = #tpu.dot_dimension_numbers<[1], [1], [0], [0], [0, 0, 1, 0], [], []>} : vector<16x16xf32>, vector<16x16xf32>, vector<16x16xf32> -> vector<16x16xf32>
    %cst_20 = arith.constant 2.500000e-01 : f32
    %42 = vector.broadcast %cst_20 : f32 to vector<16x16xf32>
    %43 = arith.mulf %41, %42 : vector<16x16xf32>
    %44 = arith.addf %43, %25 : vector<16x16xf32>
    %cst_21 = arith.constant dense<0xFF800000> : vector<16xf32>
    %45 = vector.multi_reduction <maximumf>, %44, %cst_21 [1] : vector<16x16xf32> to vector<16xf32>
    %46 = vector.shape_cast %45 : vector<16xf32> to vector<16x1xf32>
    %47 = vector.broadcast %46 : vector<16x1xf32> to vector<16x16xf32>
    %48 = arith.subf %44, %47 : vector<16x16xf32>
    %49 = math.exp %48 : vector<16x16xf32>
    %cst_22 = arith.constant dense<0.000000e+00> : vector<16xf32>
    %50 = vector.multi_reduction <add>, %49, %cst_22 [1] : vector<16x16xf32> to vector<16xf32>
    %51 = vector.shape_cast %50 : vector<16xf32> to vector<16x1xf32>
    %52 = tpu.reciprocal %51 {approx = true} : vector<16x1xf32> -> vector<16x1xf32>
    %53 = vector.broadcast %52 : vector<16x1xf32> to vector<16x16xf32>
    %54 = arith.mulf %49, %53 : vector<16x16xf32>
    %cst_23 = arith.constant dense<0.000000e+00> : vector<16x16xf32>
    %55 = tpu.matmul %54, %40, %cst_23 {dimension_numbers = #tpu.dot_dimension_numbers<[1], [0], [0], [1], [0, 0, 1, 1], [], []>} : vector<16x16xf32>, vector<16x16xf32>, vector<16x16xf32> -> vector<16x16xf32>
    %c0_24 = arith.constant 0 : index
    %c0_25 = arith.constant 0 : index
    %c0_26 = arith.constant 0 : index
    %56 = vector.load %arg6[%c0_24, %c0_25, %c0_26] : memref<2x32x32xbf16, #tpu.memory_space<vmem>>, vector<1x16x32xbf16>
    %57 = vector.shape_cast %56 : vector<1x16x32xbf16> to vector<16x32xbf16>
    %58 = arith.truncf %55 : vector<16x16xf32> to vector<16x16xbf16>
    %cst_27 = arith.constant dense<0.000000e+00> : vector<16x32xf32>
    %59 = tpu.matmul %58, %57, %cst_27 {dimension_numbers = #tpu.dot_dimension_numbers<[1], [0], [0], [1], [0, 0, 1, 1], [], []>} : vector<16x16xbf16>, vector<16x32xbf16>, vector<16x32xf32> -> vector<16x32xf32>
    %60 = arith.addf %37, %59 : vector<16x32xf32>
    %61 = vector.extract_strided_slice %34 {offsets = [0, 16], sizes = [16, 16], strides = [1, 1]} : vector<16x32xf32> to vector<16x16xf32>
    %62 = vector.extract_strided_slice %35 {offsets = [0, 16], sizes = [16, 16], strides = [1, 1]} : vector<16x32xf32> to vector<16x16xf32>
    %63 = vector.extract_strided_slice %36 {offsets = [0, 16], sizes = [16, 16], strides = [1, 1]} : vector<16x32xf32> to vector<16x16xf32>
    %cst_28 = arith.constant dense<0.000000e+00> : vector<16x16xf32>
    %64 = tpu.matmul %61, %62, %cst_28 {dimension_numbers = #tpu.dot_dimension_numbers<[1], [1], [0], [0], [0, 0, 1, 0], [], []>} : vector<16x16xf32>, vector<16x16xf32>, vector<16x16xf32> -> vector<16x16xf32>
    %cst_29 = arith.constant 2.500000e-01 : f32
    %65 = vector.broadcast %cst_29 : f32 to vector<16x16xf32>
    %66 = arith.mulf %64, %65 : vector<16x16xf32>
    %67 = arith.addf %66, %25 : vector<16x16xf32>
    %cst_30 = arith.constant dense<0xFF800000> : vector<16xf32>
    %68 = vector.multi_reduction <maximumf>, %67, %cst_30 [1] : vector<16x16xf32> to vector<16xf32>
    %69 = vector.shape_cast %68 : vector<16xf32> to vector<16x1xf32>
    %70 = vector.broadcast %69 : vector<16x1xf32> to vector<16x16xf32>
    %71 = arith.subf %67, %70 : vector<16x16xf32>
    %72 = math.exp %71 : vector<16x16xf32>
    %cst_31 = arith.constant dense<0.000000e+00> : vector<16xf32>
    %73 = vector.multi_reduction <add>, %72, %cst_31 [1] : vector<16x16xf32> to vector<16xf32>
    %74 = vector.shape_cast %73 : vector<16xf32> to vector<16x1xf32>
    %75 = tpu.reciprocal %74 {approx = true} : vector<16x1xf32> -> vector<16x1xf32>
    %76 = vector.broadcast %75 : vector<16x1xf32> to vector<16x16xf32>
    %77 = arith.mulf %72, %76 : vector<16x16xf32>
    %cst_32 = arith.constant dense<0.000000e+00> : vector<16x16xf32>
    %78 = tpu.matmul %77, %63, %cst_32 {dimension_numbers = #tpu.dot_dimension_numbers<[1], [0], [0], [1], [0, 0, 1, 1], [], []>} : vector<16x16xf32>, vector<16x16xf32>, vector<16x16xf32> -> vector<16x16xf32>
    %c0_33 = arith.constant 0 : index
    %c16 = arith.constant 16 : index
    %c0_34 = arith.constant 0 : index
    %79 = vector.load %arg6[%c0_33, %c16, %c0_34] : memref<2x32x32xbf16, #tpu.memory_space<vmem>>, vector<1x16x32xbf16>
    %80 = vector.shape_cast %79 : vector<1x16x32xbf16> to vector<16x32xbf16>
    %81 = arith.truncf %78 : vector<16x16xf32> to vector<16x16xbf16>
    %cst_35 = arith.constant dense<0.000000e+00> : vector<16x32xf32>
    %82 = tpu.matmul %81, %80, %cst_35 {dimension_numbers = #tpu.dot_dimension_numbers<[1], [0], [0], [1], [0, 0, 1, 1], [], []>} : vector<16x16xbf16>, vector<16x32xbf16>, vector<16x32xf32> -> vector<16x32xf32>
    %83 = arith.addf %60, %82 : vector<16x32xf32>
    %c0_36 = arith.constant 0 : index
    %c0_37 = arith.constant 0 : index
    %c0_38 = arith.constant 0 : index
    %84 = vector.load %arg7[%c0_36, %c0_37, %c0_38] : memref<2x1x32xf32, #tpu.memory_space<vmem>>, vector<1x1x32xf32>
    %85 = vector.shape_cast %84 : vector<1x1x32xf32> to vector<1x32xf32>
    %86 = vector.broadcast %85 : vector<1x32xf32> to vector<16x32xf32>
    %87 = arith.addf %83, %86 : vector<16x32xf32>
    %88 = arith.addf %24, %87 : vector<16x32xf32>
    %c0_39 = arith.constant 0 : index
    %c0_40 = arith.constant 0 : index
    %c0_41 = arith.constant 0 : index
    %c0_42 = arith.constant 0 : index
    %89 = vector.load %arg8[%c0_39, %c0_40, %c0_41, %c0_42] : memref<2x4x1x32xf32, #tpu.memory_space<vmem>>, vector<1x1x1x32xf32>
    %90 = vector.shape_cast %89 : vector<1x1x1x32xf32> to vector<1x32xf32>
    %c0_43 = arith.constant 0 : index
    %c1 = arith.constant 1 : index
    %c0_44 = arith.constant 0 : index
    %c0_45 = arith.constant 0 : index
    %91 = vector.load %arg8[%c0_43, %c1, %c0_44, %c0_45] : memref<2x4x1x32xf32, #tpu.memory_space<vmem>>, vector<1x1x1x32xf32>
    %92 = vector.shape_cast %91 : vector<1x1x1x32xf32> to vector<1x32xf32>
    %cst_46 = arith.constant dense<0.000000e+00> : vector<16xf32>
    %93 = vector.multi_reduction <add>, %88, %cst_46 [1] : vector<16x32xf32> to vector<16xf32>
    %94 = vector.shape_cast %93 : vector<16xf32> to vector<16x1xf32>
    %cst_47 = arith.constant 3.200000e+01 : f32
    %95 = vector.broadcast %cst_47 : f32 to vector<16x1xf32>
    %96 = arith.divf %94, %95 : vector<16x1xf32>
    %97 = vector.broadcast %96 : vector<16x1xf32> to vector<16x32xf32>
    %98 = arith.subf %88, %97 : vector<16x32xf32>
    %99 = arith.mulf %98, %98 : vector<16x32xf32>
    %cst_48 = arith.constant dense<0.000000e+00> : vector<16xf32>
    %100 = vector.multi_reduction <add>, %99, %cst_48 [1] : vector<16x32xf32> to vector<16xf32>
    %101 = vector.shape_cast %100 : vector<16xf32> to vector<16x1xf32>
    %cst_49 = arith.constant 3.200000e+01 : f32
    %102 = vector.broadcast %cst_49 : f32 to vector<16x1xf32>
    %103 = arith.divf %101, %102 : vector<16x1xf32>
    %104 = vector.broadcast %96 : vector<16x1xf32> to vector<16x32xf32>
    %105 = arith.subf %88, %104 : vector<16x32xf32>
    %cst_50 = arith.constant 9.99999996E-13 : f32
    %106 = vector.broadcast %cst_50 : f32 to vector<16x1xf32>
    %107 = arith.addf %103, %106 : vector<16x1xf32>
    %108 = math.rsqrt %107 : vector<16x1xf32>
    %109 = vector.broadcast %108 : vector<16x1xf32> to vector<16x32xf32>
    %110 = arith.mulf %105, %109 : vector<16x32xf32>
    %111 = vector.broadcast %90 : vector<1x32xf32> to vector<16x32xf32>
    %112 = arith.mulf %110, %111 : vector<16x32xf32>
    %113 = vector.broadcast %92 : vector<1x32xf32> to vector<16x32xf32>
    %114 = arith.addf %112, %113 : vector<16x32xf32>
    %115 = arith.truncf %114 : vector<16x32xf32> to vector<16x32xbf16>
    %c0_51 = arith.constant 0 : index
    %c0_52 = arith.constant 0 : index
    %c0_53 = arith.constant 0 : index
    %116 = vector.load %arg9[%c0_51, %c0_52, %c0_53] : memref<2x32x128xbf16, #tpu.memory_space<vmem>>, vector<1x32x128xbf16>
    %117 = vector.shape_cast %116 : vector<1x32x128xbf16> to vector<32x128xbf16>
    %cst_54 = arith.constant dense<0.000000e+00> : vector<16x128xf32>
    %118 = tpu.matmul %115, %117, %cst_54 {dimension_numbers = #tpu.dot_dimension_numbers<[1], [0], [0], [1], [0, 0, 1, 1], [], []>} : vector<16x32xbf16>, vector<32x128xbf16>, vector<16x128xf32> -> vector<16x128xf32>
    %c0_55 = arith.constant 0 : index
    %c0_56 = arith.constant 0 : index
    %c0_57 = arith.constant 0 : index
    %119 = vector.load %arg10[%c0_55, %c0_56, %c0_57] : memref<2x1x128xf32, #tpu.memory_space<vmem>>, vector<1x1x128xf32>
    %120 = vector.shape_cast %119 : vector<1x1x128xf32> to vector<1x128xf32>
    %121 = vector.broadcast %120 : vector<1x128xf32> to vector<16x128xf32>
    %122 = arith.addf %118, %121 : vector<16x128xf32>
    %cst_58 = arith.constant 5.000000e-01 : f32
    %123 = vector.broadcast %cst_58 : f32 to vector<16x128xf32>
    %124 = arith.mulf %123, %122 : vector<16x128xf32>
    %cst_59 = arith.constant 4.471500e-02 : f32
    %125 = vector.broadcast %cst_59 : f32 to vector<16x128xf32>
    %126 = arith.mulf %125, %122 : vector<16x128xf32>
    %127 = arith.mulf %126, %122 : vector<16x128xf32>
    %128 = arith.mulf %127, %122 : vector<16x128xf32>
    %129 = arith.addf %122, %128 : vector<16x128xf32>
    %cst_60 = arith.constant 0.797884583 : f32
    %130 = vector.broadcast %cst_60 : f32 to vector<16x128xf32>
    %131 = arith.mulf %130, %129 : vector<16x128xf32>
    %132 = math.tanh %131 : vector<16x128xf32>
    %cst_61 = arith.constant 1.000000e+00 : f32
    %133 = vector.broadcast %cst_61 : f32 to vector<16x128xf32>
    %134 = arith.addf %133, %132 : vector<16x128xf32>
    %135 = arith.mulf %124, %134 : vector<16x128xf32>
    %136 = arith.truncf %135 : vector<16x128xf32> to vector<16x128xbf16>
    %c0_62 = arith.constant 0 : index
    %c0_63 = arith.constant 0 : index
    %c0_64 = arith.constant 0 : index
    %137 = vector.load %arg11[%c0_62, %c0_63, %c0_64] : memref<2x128x32xbf16, #tpu.memory_space<vmem>>, vector<1x128x32xbf16>
    %138 = vector.shape_cast %137 : vector<1x128x32xbf16> to vector<128x32xbf16>
    %cst_65 = arith.constant dense<0.000000e+00> : vector<16x32xf32>
    %139 = tpu.matmul %136, %138, %cst_65 {dimension_numbers = #tpu.dot_dimension_numbers<[1], [0], [0], [1], [0, 0, 1, 1], [], []>} : vector<16x128xbf16>, vector<128x32xbf16>, vector<16x32xf32> -> vector<16x32xf32>
    %c0_66 = arith.constant 0 : index
    %c0_67 = arith.constant 0 : index
    %c0_68 = arith.constant 0 : index
    %140 = vector.load %arg12[%c0_66, %c0_67, %c0_68] : memref<2x1x32xf32, #tpu.memory_space<vmem>>, vector<1x1x32xf32>
    %141 = vector.shape_cast %140 : vector<1x1x32xf32> to vector<1x32xf32>
    %142 = vector.broadcast %141 : vector<1x32xf32> to vector<16x32xf32>
    %143 = arith.addf %139, %142 : vector<16x32xf32>
    %144 = arith.addf %114, %143 : vector<16x32xf32>
    %c0_69 = arith.constant 0 : index
    %c2 = arith.constant 2 : index
    %c0_70 = arith.constant 0 : index
    %c0_71 = arith.constant 0 : index
    %145 = vector.load %arg8[%c0_69, %c2, %c0_70, %c0_71] : memref<2x4x1x32xf32, #tpu.memory_space<vmem>>, vector<1x1x1x32xf32>
    %146 = vector.shape_cast %145 : vector<1x1x1x32xf32> to vector<1x32xf32>
    %c0_72 = arith.constant 0 : index
    %c3 = arith.constant 3 : index
    %c0_73 = arith.constant 0 : index
    %c0_74 = arith.constant 0 : index
    %147 = vector.load %arg8[%c0_72, %c3, %c0_73, %c0_74] : memref<2x4x1x32xf32, #tpu.memory_space<vmem>>, vector<1x1x1x32xf32>
    %148 = vector.shape_cast %147 : vector<1x1x1x32xf32> to vector<1x32xf32>
    %cst_75 = arith.constant dense<0.000000e+00> : vector<16xf32>
    %149 = vector.multi_reduction <add>, %144, %cst_75 [1] : vector<16x32xf32> to vector<16xf32>
    %150 = vector.shape_cast %149 : vector<16xf32> to vector<16x1xf32>
    %cst_76 = arith.constant 3.200000e+01 : f32
    %151 = vector.broadcast %cst_76 : f32 to vector<16x1xf32>
    %152 = arith.divf %150, %151 : vector<16x1xf32>
    %153 = vector.broadcast %152 : vector<16x1xf32> to vector<16x32xf32>
    %154 = arith.subf %144, %153 : vector<16x32xf32>
    %155 = arith.mulf %154, %154 : vector<16x32xf32>
    %cst_77 = arith.constant dense<0.000000e+00> : vector<16xf32>
    %156 = vector.multi_reduction <add>, %155, %cst_77 [1] : vector<16x32xf32> to vector<16xf32>
    %157 = vector.shape_cast %156 : vector<16xf32> to vector<16x1xf32>
    %cst_78 = arith.constant 3.200000e+01 : f32
    %158 = vector.broadcast %cst_78 : f32 to vector<16x1xf32>
    %159 = arith.divf %157, %158 : vector<16x1xf32>
    %160 = vector.broadcast %152 : vector<16x1xf32> to vector<16x32xf32>
    %161 = arith.subf %144, %160 : vector<16x32xf32>
    %cst_79 = arith.constant 9.99999996E-13 : f32
    %162 = vector.broadcast %cst_79 : f32 to vector<16x1xf32>
    %163 = arith.addf %159, %162 : vector<16x1xf32>
    %164 = math.rsqrt %163 : vector<16x1xf32>
    %165 = vector.broadcast %164 : vector<16x1xf32> to vector<16x32xf32>
    %166 = arith.mulf %161, %165 : vector<16x32xf32>
    %167 = vector.broadcast %146 : vector<1x32xf32> to vector<16x32xf32>
    %168 = arith.mulf %166, %167 : vector<16x32xf32>
    %169 = vector.broadcast %148 : vector<1x32xf32> to vector<16x32xf32>
    %170 = arith.addf %168, %169 : vector<16x32xf32>
    %171 = arith.truncf %170 : vector<16x32xf32> to vector<16x32xbf16>
    %c1_80 = arith.constant 1 : index
    %c0_81 = arith.constant 0 : index
    %c0_82 = arith.constant 0 : index
    %172 = vector.load %arg4[%c1_80, %c0_81, %c0_82] : memref<2x32x128xbf16, #tpu.memory_space<vmem>>, vector<1x32x128xbf16>
    %173 = vector.shape_cast %172 : vector<1x32x128xbf16> to vector<32x128xbf16>
    %cst_83 = arith.constant dense<0.000000e+00> : vector<16x128xf32>
    %174 = tpu.matmul %171, %173, %cst_83 {dimension_numbers = #tpu.dot_dimension_numbers<[1], [0], [0], [1], [0, 0, 1, 1], [], []>} : vector<16x32xbf16>, vector<32x128xbf16>, vector<16x128xf32> -> vector<16x128xf32>
    %c1_84 = arith.constant 1 : index
    %c0_85 = arith.constant 0 : index
    %c0_86 = arith.constant 0 : index
    %175 = vector.load %arg5[%c1_84, %c0_85, %c0_86] : memref<2x1x128xf32, #tpu.memory_space<vmem>>, vector<1x1x128xf32>
    %176 = vector.shape_cast %175 : vector<1x1x128xf32> to vector<1x128xf32>
    %177 = vector.broadcast %176 : vector<1x128xf32> to vector<16x128xf32>
    %178 = arith.addf %174, %177 : vector<16x128xf32>
    %179 = vector.extract_strided_slice %178 {offsets = [0, 0], sizes = [16, 32], strides = [1, 1]} : vector<16x128xf32> to vector<16x32xf32>
    %180 = vector.extract_strided_slice %178 {offsets = [0, 32], sizes = [16, 32], strides = [1, 1]} : vector<16x128xf32> to vector<16x32xf32>
    %181 = vector.extract_strided_slice %178 {offsets = [0, 64], sizes = [16, 32], strides = [1, 1]} : vector<16x128xf32> to vector<16x32xf32>
    %cst_87 = arith.constant 0.000000e+00 : f32
    %182 = vector.broadcast %cst_87 : f32 to vector<16x32xf32>
    %183 = vector.extract_strided_slice %179 {offsets = [0, 0], sizes = [16, 16], strides = [1, 1]} : vector<16x32xf32> to vector<16x16xf32>
    %184 = vector.extract_strided_slice %180 {offsets = [0, 0], sizes = [16, 16], strides = [1, 1]} : vector<16x32xf32> to vector<16x16xf32>
    %185 = vector.extract_strided_slice %181 {offsets = [0, 0], sizes = [16, 16], strides = [1, 1]} : vector<16x32xf32> to vector<16x16xf32>
    %cst_88 = arith.constant dense<0.000000e+00> : vector<16x16xf32>
    %186 = tpu.matmul %183, %184, %cst_88 {dimension_numbers = #tpu.dot_dimension_numbers<[1], [1], [0], [0], [0, 0, 1, 0], [], []>} : vector<16x16xf32>, vector<16x16xf32>, vector<16x16xf32> -> vector<16x16xf32>
    %cst_89 = arith.constant 2.500000e-01 : f32
    %187 = vector.broadcast %cst_89 : f32 to vector<16x16xf32>
    %188 = arith.mulf %186, %187 : vector<16x16xf32>
    %189 = arith.addf %188, %25 : vector<16x16xf32>
    %cst_90 = arith.constant dense<0xFF800000> : vector<16xf32>
    %190 = vector.multi_reduction <maximumf>, %189, %cst_90 [1] : vector<16x16xf32> to vector<16xf32>
    %191 = vector.shape_cast %190 : vector<16xf32> to vector<16x1xf32>
    %192 = vector.broadcast %191 : vector<16x1xf32> to vector<16x16xf32>
    %193 = arith.subf %189, %192 : vector<16x16xf32>
    %194 = math.exp %193 : vector<16x16xf32>
    %cst_91 = arith.constant dense<0.000000e+00> : vector<16xf32>
    %195 = vector.multi_reduction <add>, %194, %cst_91 [1] : vector<16x16xf32> to vector<16xf32>
    %196 = vector.shape_cast %195 : vector<16xf32> to vector<16x1xf32>
    %197 = tpu.reciprocal %196 {approx = true} : vector<16x1xf32> -> vector<16x1xf32>
    %198 = vector.broadcast %197 : vector<16x1xf32> to vector<16x16xf32>
    %199 = arith.mulf %194, %198 : vector<16x16xf32>
    %cst_92 = arith.constant dense<0.000000e+00> : vector<16x16xf32>
    %200 = tpu.matmul %199, %185, %cst_92 {dimension_numbers = #tpu.dot_dimension_numbers<[1], [0], [0], [1], [0, 0, 1, 1], [], []>} : vector<16x16xf32>, vector<16x16xf32>, vector<16x16xf32> -> vector<16x16xf32>
    %c1_93 = arith.constant 1 : index
    %c0_94 = arith.constant 0 : index
    %c0_95 = arith.constant 0 : index
    %201 = vector.load %arg6[%c1_93, %c0_94, %c0_95] : memref<2x32x32xbf16, #tpu.memory_space<vmem>>, vector<1x16x32xbf16>
    %202 = vector.shape_cast %201 : vector<1x16x32xbf16> to vector<16x32xbf16>
    %203 = arith.truncf %200 : vector<16x16xf32> to vector<16x16xbf16>
    %cst_96 = arith.constant dense<0.000000e+00> : vector<16x32xf32>
    %204 = tpu.matmul %203, %202, %cst_96 {dimension_numbers = #tpu.dot_dimension_numbers<[1], [0], [0], [1], [0, 0, 1, 1], [], []>} : vector<16x16xbf16>, vector<16x32xbf16>, vector<16x32xf32> -> vector<16x32xf32>
    %205 = arith.addf %182, %204 : vector<16x32xf32>
    %206 = vector.extract_strided_slice %179 {offsets = [0, 16], sizes = [16, 16], strides = [1, 1]} : vector<16x32xf32> to vector<16x16xf32>
    %207 = vector.extract_strided_slice %180 {offsets = [0, 16], sizes = [16, 16], strides = [1, 1]} : vector<16x32xf32> to vector<16x16xf32>
    %208 = vector.extract_strided_slice %181 {offsets = [0, 16], sizes = [16, 16], strides = [1, 1]} : vector<16x32xf32> to vector<16x16xf32>
    %cst_97 = arith.constant dense<0.000000e+00> : vector<16x16xf32>
    %209 = tpu.matmul %206, %207, %cst_97 {dimension_numbers = #tpu.dot_dimension_numbers<[1], [1], [0], [0], [0, 0, 1, 0], [], []>} : vector<16x16xf32>, vector<16x16xf32>, vector<16x16xf32> -> vector<16x16xf32>
    %cst_98 = arith.constant 2.500000e-01 : f32
    %210 = vector.broadcast %cst_98 : f32 to vector<16x16xf32>
    %211 = arith.mulf %209, %210 : vector<16x16xf32>
    %212 = arith.addf %211, %25 : vector<16x16xf32>
    %cst_99 = arith.constant dense<0xFF800000> : vector<16xf32>
    %213 = vector.multi_reduction <maximumf>, %212, %cst_99 [1] : vector<16x16xf32> to vector<16xf32>
    %214 = vector.shape_cast %213 : vector<16xf32> to vector<16x1xf32>
    %215 = vector.broadcast %214 : vector<16x1xf32> to vector<16x16xf32>
    %216 = arith.subf %212, %215 : vector<16x16xf32>
    %217 = math.exp %216 : vector<16x16xf32>
    %cst_100 = arith.constant dense<0.000000e+00> : vector<16xf32>
    %218 = vector.multi_reduction <add>, %217, %cst_100 [1] : vector<16x16xf32> to vector<16xf32>
    %219 = vector.shape_cast %218 : vector<16xf32> to vector<16x1xf32>
    %220 = tpu.reciprocal %219 {approx = true} : vector<16x1xf32> -> vector<16x1xf32>
    %221 = vector.broadcast %220 : vector<16x1xf32> to vector<16x16xf32>
    %222 = arith.mulf %217, %221 : vector<16x16xf32>
    %cst_101 = arith.constant dense<0.000000e+00> : vector<16x16xf32>
    %223 = tpu.matmul %222, %208, %cst_101 {dimension_numbers = #tpu.dot_dimension_numbers<[1], [0], [0], [1], [0, 0, 1, 1], [], []>} : vector<16x16xf32>, vector<16x16xf32>, vector<16x16xf32> -> vector<16x16xf32>
    %c1_102 = arith.constant 1 : index
    %c16_103 = arith.constant 16 : index
    %c0_104 = arith.constant 0 : index
    %224 = vector.load %arg6[%c1_102, %c16_103, %c0_104] : memref<2x32x32xbf16, #tpu.memory_space<vmem>>, vector<1x16x32xbf16>
    %225 = vector.shape_cast %224 : vector<1x16x32xbf16> to vector<16x32xbf16>
    %226 = arith.truncf %223 : vector<16x16xf32> to vector<16x16xbf16>
    %cst_105 = arith.constant dense<0.000000e+00> : vector<16x32xf32>
    %227 = tpu.matmul %226, %225, %cst_105 {dimension_numbers = #tpu.dot_dimension_numbers<[1], [0], [0], [1], [0, 0, 1, 1], [], []>} : vector<16x16xbf16>, vector<16x32xbf16>, vector<16x32xf32> -> vector<16x32xf32>
    %228 = arith.addf %205, %227 : vector<16x32xf32>
    %c1_106 = arith.constant 1 : index
    %c0_107 = arith.constant 0 : index
    %c0_108 = arith.constant 0 : index
    %229 = vector.load %arg7[%c1_106, %c0_107, %c0_108] : memref<2x1x32xf32, #tpu.memory_space<vmem>>, vector<1x1x32xf32>
    %230 = vector.shape_cast %229 : vector<1x1x32xf32> to vector<1x32xf32>
    %231 = vector.broadcast %230 : vector<1x32xf32> to vector<16x32xf32>
    %232 = arith.addf %228, %231 : vector<16x32xf32>
    %233 = arith.addf %170, %232 : vector<16x32xf32>
    %c1_109 = arith.constant 1 : index
    %c0_110 = arith.constant 0 : index
    %c0_111 = arith.constant 0 : index
    %c0_112 = arith.constant 0 : index
    %234 = vector.load %arg8[%c1_109, %c0_110, %c0_111, %c0_112] : memref<2x4x1x32xf32, #tpu.memory_space<vmem>>, vector<1x1x1x32xf32>
    %235 = vector.shape_cast %234 : vector<1x1x1x32xf32> to vector<1x32xf32>
    %c1_113 = arith.constant 1 : index
    %c1_114 = arith.constant 1 : index
    %c0_115 = arith.constant 0 : index
    %c0_116 = arith.constant 0 : index
    %236 = vector.load %arg8[%c1_113, %c1_114, %c0_115, %c0_116] : memref<2x4x1x32xf32, #tpu.memory_space<vmem>>, vector<1x1x1x32xf32>
    %237 = vector.shape_cast %236 : vector<1x1x1x32xf32> to vector<1x32xf32>
    %cst_117 = arith.constant dense<0.000000e+00> : vector<16xf32>
    %238 = vector.multi_reduction <add>, %233, %cst_117 [1] : vector<16x32xf32> to vector<16xf32>
    %239 = vector.shape_cast %238 : vector<16xf32> to vector<16x1xf32>
    %cst_118 = arith.constant 3.200000e+01 : f32
    %240 = vector.broadcast %cst_118 : f32 to vector<16x1xf32>
    %241 = arith.divf %239, %240 : vector<16x1xf32>
    %242 = vector.broadcast %241 : vector<16x1xf32> to vector<16x32xf32>
    %243 = arith.subf %233, %242 : vector<16x32xf32>
    %244 = arith.mulf %243, %243 : vector<16x32xf32>
    %cst_119 = arith.constant dense<0.000000e+00> : vector<16xf32>
    %245 = vector.multi_reduction <add>, %244, %cst_119 [1] : vector<16x32xf32> to vector<16xf32>
    %246 = vector.shape_cast %245 : vector<16xf32> to vector<16x1xf32>
    %cst_120 = arith.constant 3.200000e+01 : f32
    %247 = vector.broadcast %cst_120 : f32 to vector<16x1xf32>
    %248 = arith.divf %246, %247 : vector<16x1xf32>
    %249 = vector.broadcast %241 : vector<16x1xf32> to vector<16x32xf32>
    %250 = arith.subf %233, %249 : vector<16x32xf32>
    %cst_121 = arith.constant 9.99999996E-13 : f32
    %251 = vector.broadcast %cst_121 : f32 to vector<16x1xf32>
    %252 = arith.addf %248, %251 : vector<16x1xf32>
    %253 = math.rsqrt %252 : vector<16x1xf32>
    %254 = vector.broadcast %253 : vector<16x1xf32> to vector<16x32xf32>
    %255 = arith.mulf %250, %254 : vector<16x32xf32>
    %256 = vector.broadcast %235 : vector<1x32xf32> to vector<16x32xf32>
    %257 = arith.mulf %255, %256 : vector<16x32xf32>
    %258 = vector.broadcast %237 : vector<1x32xf32> to vector<16x32xf32>
    %259 = arith.addf %257, %258 : vector<16x32xf32>
    %260 = arith.truncf %259 : vector<16x32xf32> to vector<16x32xbf16>
    %c1_122 = arith.constant 1 : index
    %c0_123 = arith.constant 0 : index
    %c0_124 = arith.constant 0 : index
    %261 = vector.load %arg9[%c1_122, %c0_123, %c0_124] : memref<2x32x128xbf16, #tpu.memory_space<vmem>>, vector<1x32x128xbf16>
    %262 = vector.shape_cast %261 : vector<1x32x128xbf16> to vector<32x128xbf16>
    %cst_125 = arith.constant dense<0.000000e+00> : vector<16x128xf32>
    %263 = tpu.matmul %260, %262, %cst_125 {dimension_numbers = #tpu.dot_dimension_numbers<[1], [0], [0], [1], [0, 0, 1, 1], [], []>} : vector<16x32xbf16>, vector<32x128xbf16>, vector<16x128xf32> -> vector<16x128xf32>
    %c1_126 = arith.constant 1 : index
    %c0_127 = arith.constant 0 : index
    %c0_128 = arith.constant 0 : index
    %264 = vector.load %arg10[%c1_126, %c0_127, %c0_128] : memref<2x1x128xf32, #tpu.memory_space<vmem>>, vector<1x1x128xf32>
    %265 = vector.shape_cast %264 : vector<1x1x128xf32> to vector<1x128xf32>
    %266 = vector.broadcast %265 : vector<1x128xf32> to vector<16x128xf32>
    %267 = arith.addf %263, %266 : vector<16x128xf32>
    %cst_129 = arith.constant 5.000000e-01 : f32
    %268 = vector.broadcast %cst_129 : f32 to vector<16x128xf32>
    %269 = arith.mulf %268, %267 : vector<16x128xf32>
    %cst_130 = arith.constant 4.471500e-02 : f32
    %270 = vector.broadcast %cst_130 : f32 to vector<16x128xf32>
    %271 = arith.mulf %270, %267 : vector<16x128xf32>
    %272 = arith.mulf %271, %267 : vector<16x128xf32>
    %273 = arith.mulf %272, %267 : vector<16x128xf32>
    %274 = arith.addf %267, %273 : vector<16x128xf32>
    %cst_131 = arith.constant 0.797884583 : f32
    %275 = vector.broadcast %cst_131 : f32 to vector<16x128xf32>
    %276 = arith.mulf %275, %274 : vector<16x128xf32>
    %277 = math.tanh %276 : vector<16x128xf32>
    %cst_132 = arith.constant 1.000000e+00 : f32
    %278 = vector.broadcast %cst_132 : f32 to vector<16x128xf32>
    %279 = arith.addf %278, %277 : vector<16x128xf32>
    %280 = arith.mulf %269, %279 : vector<16x128xf32>
    %281 = arith.truncf %280 : vector<16x128xf32> to vector<16x128xbf16>
    %c1_133 = arith.constant 1 : index
    %c0_134 = arith.constant 0 : index
    %c0_135 = arith.constant 0 : index
    %282 = vector.load %arg11[%c1_133, %c0_134, %c0_135] : memref<2x128x32xbf16, #tpu.memory_space<vmem>>, vector<1x128x32xbf16>
    %283 = vector.shape_cast %282 : vector<1x128x32xbf16> to vector<128x32xbf16>
    %cst_136 = arith.constant dense<0.000000e+00> : vector<16x32xf32>
    %284 = tpu.matmul %281, %283, %cst_136 {dimension_numbers = #tpu.dot_dimension_numbers<[1], [0], [0], [1], [0, 0, 1, 1], [], []>} : vector<16x128xbf16>, vector<128x32xbf16>, vector<16x32xf32> -> vector<16x32xf32>
    %c1_137 = arith.constant 1 : index
    %c0_138 = arith.constant 0 : index
    %c0_139 = arith.constant 0 : index
    %285 = vector.load %arg12[%c1_137, %c0_138, %c0_139] : memref<2x1x32xf32, #tpu.memory_space<vmem>>, vector<1x1x32xf32>
    %286 = vector.shape_cast %285 : vector<1x1x32xf32> to vector<1x32xf32>
    %287 = vector.broadcast %286 : vector<1x32xf32> to vector<16x32xf32>
    %288 = arith.addf %284, %287 : vector<16x32xf32>
    %289 = arith.addf %259, %288 : vector<16x32xf32>
    %c1_140 = arith.constant 1 : index
    %c2_141 = arith.constant 2 : index
    %c0_142 = arith.constant 0 : index
    %c0_143 = arith.constant 0 : index
    %290 = vector.load %arg8[%c1_140, %c2_141, %c0_142, %c0_143] : memref<2x4x1x32xf32, #tpu.memory_space<vmem>>, vector<1x1x1x32xf32>
    %291 = vector.shape_cast %290 : vector<1x1x1x32xf32> to vector<1x32xf32>
    %c1_144 = arith.constant 1 : index
    %c3_145 = arith.constant 3 : index
    %c0_146 = arith.constant 0 : index
    %c0_147 = arith.constant 0 : index
    %292 = vector.load %arg8[%c1_144, %c3_145, %c0_146, %c0_147] : memref<2x4x1x32xf32, #tpu.memory_space<vmem>>, vector<1x1x1x32xf32>
    %293 = vector.shape_cast %292 : vector<1x1x1x32xf32> to vector<1x32xf32>
    %cst_148 = arith.constant dense<0.000000e+00> : vector<16xf32>
    %294 = vector.multi_reduction <add>, %289, %cst_148 [1] : vector<16x32xf32> to vector<16xf32>
    %295 = vector.shape_cast %294 : vector<16xf32> to vector<16x1xf32>
    %cst_149 = arith.constant 3.200000e+01 : f32
    %296 = vector.broadcast %cst_149 : f32 to vector<16x1xf32>
    %297 = arith.divf %295, %296 : vector<16x1xf32>
    %298 = vector.broadcast %297 : vector<16x1xf32> to vector<16x32xf32>
    %299 = arith.subf %289, %298 : vector<16x32xf32>
    %300 = arith.mulf %299, %299 : vector<16x32xf32>
    %cst_150 = arith.constant dense<0.000000e+00> : vector<16xf32>
    %301 = vector.multi_reduction <add>, %300, %cst_150 [1] : vector<16x32xf32> to vector<16xf32>
    %302 = vector.shape_cast %301 : vector<16xf32> to vector<16x1xf32>
    %cst_151 = arith.constant 3.200000e+01 : f32
    %303 = vector.broadcast %cst_151 : f32 to vector<16x1xf32>
    %304 = arith.divf %302, %303 : vector<16x1xf32>
    %305 = vector.broadcast %297 : vector<16x1xf32> to vector<16x32xf32>
    %306 = arith.subf %289, %305 : vector<16x32xf32>
    %cst_152 = arith.constant 9.99999996E-13 : f32
    %307 = vector.broadcast %cst_152 : f32 to vector<16x1xf32>
    %308 = arith.addf %304, %307 : vector<16x1xf32>
    %309 = math.rsqrt %308 : vector<16x1xf32>
    %310 = vector.broadcast %309 : vector<16x1xf32> to vector<16x32xf32>
    %311 = arith.mulf %306, %310 : vector<16x32xf32>
    %312 = vector.broadcast %291 : vector<1x32xf32> to vector<16x32xf32>
    %313 = arith.mulf %311, %312 : vector<16x32xf32>
    %314 = vector.broadcast %293 : vector<1x32xf32> to vector<16x32xf32>
    %315 = arith.addf %313, %314 : vector<16x32xf32>
    %316 = vector.extract_strided_slice %315 {offsets = [0, 0], sizes = [1, 32], strides = [1, 1]} : vector<16x32xf32> to vector<1x32xf32>
    %317 = vector.extract_strided_slice %315 {offsets = [8, 0], sizes = [1, 32], strides = [1, 1]} : vector<16x32xf32> to vector<1x32xf32>
    %318 = tpu.concatenate %316, %317 in 0 : vector<1x32xf32>, vector<1x32xf32> -> vector<2x32xf32>
    %319 = arith.truncf %318 : vector<2x32xf32> to vector<2x32xbf16>
    %c0_153 = arith.constant 0 : index
    %c0_154 = arith.constant 0 : index
    %320 = vector.load %arg13[%c0_153, %c0_154] : memref<32x32xbf16, #tpu.memory_space<vmem>>, vector<32x32xbf16>
    %cst_155 = arith.constant dense<0.000000e+00> : vector<2x32xf32>
    %321 = tpu.matmul %319, %320, %cst_155 {dimension_numbers = #tpu.dot_dimension_numbers<[1], [0], [0], [1], [0, 0, 1, 1], [], []>} : vector<2x32xbf16>, vector<32x32xbf16>, vector<2x32xf32> -> vector<2x32xf32>
    %c0_156 = arith.constant 0 : index
    %c0_157 = arith.constant 0 : index
    %322 = vector.load %arg14[%c0_156, %c0_157] : memref<1x32xf32, #tpu.memory_space<vmem>>, vector<1x32xf32>
    %323 = vector.broadcast %322 : vector<1x32xf32> to vector<2x32xf32>
    %324 = arith.addf %321, %323 : vector<2x32xf32>
    %325 = math.tanh %324 : vector<2x32xf32>
    %326 = arith.truncf %325 : vector<2x32xf32> to vector<2x32xbf16>
    %c0_158 = arith.constant 0 : index
    %c0_159 = arith.constant 0 : index
    %327 = vector.load %arg15[%c0_158, %c0_159] : memref<32x128xbf16, #tpu.memory_space<vmem>>, vector<32x128xbf16>
    %cst_160 = arith.constant dense<0.000000e+00> : vector<2x128xf32>
    %328 = tpu.matmul %326, %327, %cst_160 {dimension_numbers = #tpu.dot_dimension_numbers<[1], [0], [0], [1], [0, 0, 1, 1], [], []>} : vector<2x32xbf16>, vector<32x128xbf16>, vector<2x128xf32> -> vector<2x128xf32>
    %c0_161 = arith.constant 0 : index
    %c0_162 = arith.constant 0 : index
    %329 = vector.load %arg16[%c0_161, %c0_162] : memref<1x128xf32, #tpu.memory_space<vmem>>, vector<1x128xf32>
    %330 = vector.broadcast %329 : vector<1x128xf32> to vector<2x128xf32>
    %331 = arith.addf %328, %330 : vector<2x128xf32>
    %c0_163 = arith.constant 0 : index
    %c0_164 = arith.constant 0 : index
    %332 = vector.load %arg17[%c0_163, %c0_164] : memref<2x128xf32, #tpu.memory_space<vmem>>, vector<2x128xf32>
    tpu.vector_store %arg17[%c0_163, %c0_164], %331 {strides = array<i32>} : memref<2x128xf32, #tpu.memory_space<vmem>>, vector<2x128xf32>,
    return
  }
}

</mosaic_0001>

<bundles_post_ra>
// kernel: multi_task_forward.1
= control target key start
LH: loop header
LB: loop body
LE: loop exit
PB: predicated region body
PF: predicated region fallthrough
CT: control target
= control target key end

     0   :  { %vm61_vm0 = vcmask 261120   ;;  %v2578_v15 = vmov 0.0   ;;  %vm2579_vm1 = vmmov 0   ;;  %vm181_vm2 = vcmask 130048   ;;  %s2582_s25 = smov 112   ;;  %s3054_s0 = inlined_call_operand.vmem [shape: f32[16,32], index: 0, kind: input, shape index: {}]   ;;  %s3055_s4 = inlined_call_operand.vmem [shape: bf16[2,32,128], index: 4, kind: input, shape index: {}]   ;;  %s3056_s2 = inlined_call_operand.vmem [shape: f32[1,32], index: 2, kind: input, shape index: {}]   ;;  %s3057_s3 = inlined_call_operand.vmem [shape: f32[1,32], index: 3, kind: input, shape index: {}]   ;;  %s3058_s5 = inlined_call_operand.vmem [shape: f32[2,1,128], index: 5, kind: input, shape index: {}]   ;;  %s3059_s1 = inlined_call_operand.vmem [shape: f32[16,16], index: 1, kind: input, shape index: {}]   ;;  %s3060_s6 = inlined_call_operand.vmem [shape: bf16[2,32,32], index: 6, kind: input, shape index: {}]   ;;  %s3061_s7 = inlined_call_operand.vmem [shape: f32[2,1,32], index: 7, kind: input, shape index: {}]   ;;  %s3062_s9 = inlined_call_operand.vmem [shape: bf16[2,32,128], index: 9, kind: input, shape index: {}]   ;;  %s3063_s8 = inlined_call_operand.vmem [shape: f32[2,4,1,32], index: 8, kind: input, shape index: {}]   ;;  %s3064_s11 = inlined_call_operand.vmem [shape: bf16[2,128,32], index: 11, kind: input, shape index: {}]   ;;  %s3065_s10 = inlined_call_operand.vmem [shape: f32[2,1,128], index: 10, kind: input, shape index: {}]   ;;  %s3066_s12 = inlined_call_operand.vmem [shape: f32[2,1,32], index: 12, kind: input, shape index: {}]   ;;  %s3067_s13 = inlined_call_operand.vmem [shape: bf16[32,32], index: 13, kind: input, shape index: {}]   ;;  %s3068_s15 = inlined_call_operand.vmem [shape: bf16[32,128], index: 15, kind: input, shape index: {}]   ;;  %s3069_s14 = inlined_call_operand.vmem [shape: f32[1,32], index: 14, kind: input, shape index: {}]   ;;  %s3070_s16 = inlined_call_operand.vmem [shape: f32[1,128], index: 16, kind: input, shape index: {}]   ;;  %s3071_s17 = inlined_call_operand.vmem [shape: f32[2,128], index: 17, kind: output, shape index: {}]  }
   0x1   :  { %3074 = sst [smem:[#allocation2_spill]] %s3054_s0  ;;  %2229 = vmatprep.subr.bf16.mxu0 %v2578_v15  ;;  %2233 = vmatprep.mubr.msk.bf16.mxu0 %vm2579_vm1, %v2578_v15  ;;  %v2028_v25 = vld [vmem:[%s3056_s2] ss:$0 sm:$0xff]  ;;  %s2580_s2 = smov 80   ;;  %vm2722_vm3 = vmpackc.low %vm181_vm2, %vm181_vm2  ;;  %v2743_v54 = vld [vmem:[%s3059_s1 + $0x8] sm:$0xff]  ;;  %vm1886_vm4 = vcmask 1040384  }
   0x2   :  { %3075 = sst [smem:[#allocation3_spill]] %s3055_s4  ;;  %s3076_s26 = sld [smem:[#allocation2_spill]]  ;;  %v2029_v29 = vld [vmem:[%s3057_s3] ss:$0 sm:$0xff] }
   0x3   :  { %s3077_s30 = sld [smem:[#allocation3_spill]]  ;;  %v2030_v34 = vld [vmem:[%s3058_s5] ss:$0 sm:$0xff]  ;;  %s2581_s3 = smov 96  }
   0x4   :  { %v2748_v58 = vld [vmem:[%s3059_s1] sm:$0xff]  ;;  %s2583_s1 = smov 48   ;;  %s2584_s0 = smov 64  }
   0x8   :  { %v57_v0 = vld [vmem:[%s3076_s26] sm:$0xff]  ;;  %v58_v1 = vld [vmem:[%s3076_s26 + $0x8] sm:$0xff] }
   0x9   :  { %v62_v2 = vsel %vm61_vm0, %v57_v0, 0.0  ;;  %v65_v3 = vsel %vm61_vm0, %v58_v1, 0.0  ;;  %v2484_v14 = vld [vmem:[%s3077_s30] sm:$0xff]   ;;  %v2485_v16 = vld [vmem:[%s3077_s30 + $0x8] sm:$0xff]  }
   0xa   :  { %63 = vadd.xlane.f32.xlu0 %v62_v2  ;;  %2230 = vmatpush3.bf16.msra.mxu0 %v2484_v14 }
   0xb   :  { %2231 = vmatprep.subr.bf16.mxu0 %v2578_v15 }
   0xe   :  { %66 = vadd.xlane.f32.xlu0 %v65_v3  ;;  %2232 = vmatpush3.bf16.msra.mxu0 %v2485_v16 }
  0x97   :  { %v64_v4 = vpop.xlane.xlu0 %63 }
  0x98   :  { %v69_v5 = vmul.f32 0.03125, %v64_v4 }
  0x9a   :  { %v71_v6 = vsub.f32 %v57_v0, %v69_v5 }
  0x9b   :  { %v67_v7 = vpop.xlane.xlu0 %66 }
  0x9c   :  { %v70_v8 = vmul.f32 0.03125, %v67_v7  ;;  %v73_v9 = vmul.f32 %v71_v6, %v71_v6 }
  0x9e   :  { %v72_v10 = vsub.f32 %v58_v1, %v70_v8  ;;  %v75_v11 = vsel %vm61_vm0, %v73_v9, 0.0 }
  0x9f   :  { %76 = vadd.xlane.f32.xlu1 %v75_v11 }
  0xa0   :  { %v74_v12 = vmul.f32 %v72_v10, %v72_v10 }
  0xa2   :  { %v78_v13 = vsel %vm61_vm0, %v74_v12, 0.0 }
  0xa3   :  { %79 = vadd.xlane.f32.xlu1 %v78_v13 }
 0x12c   :  { %v77_v17 = vpop.xlane.xlu1 %76 }
 0x12d   :  { %v81_v18 = vmul.f32 0.03125, %v77_v17 }
 0x12f   :  { %v83_v19 = vadd.f32 1e-12, %v81_v18 }
 0x130   :  { %v80_v20 = vpop.xlane.xlu1 %79 }
 0x131   :  { %2516 = vrsqrt.f32 %v83_v19  ;;  %v82_v21 = vmul.f32 0.03125, %v80_v20 }
 0x133   :  { %v84_v22 = vadd.f32 1e-12, %v82_v21 }
 0x135   :  { %2518 = vrsqrt.f32 %v84_v22 }
 0x13b   :  { %v2517_v23 = vpop.eup %2516 }
 0x13c   :  { %v87_v24 = vmul.f32 %v2517_v23, %v71_v6 }
 0x13e   :  { %v95_v28 = vmul.f32 %v2028_v25, %v87_v24 }
 0x13f   :  { %v2519_v26 = vpop.eup %2518 }
 0x140   :  { %v88_v27 = vmul.f32 %v2519_v26, %v72_v10  ;;  %v2701_v31 = vadd.f32 %v2029_v29, %v95_v28 }
 0x142   :  { %v96_v30 = vmul.f32 %v2028_v25, %v88_v27 }
 0x144   :  { %v2703_v32 = vadd.f32 %v2029_v29, %v96_v30 }
 0x146   :  { %v107_v33 = vpack.c.bf16 %v2703_v32, %v2701_v31 }
 0x148   :  { %2234 = vmatmul.mubr.msk.bf16.vlgmr.msra.gmra.mrb[0].mxu0 %vm61_vm0, %v107_v33 }
 0x21b   :  { %v168_v35 = vpop.f32.mrb[0].mxu0 }
 0x21c   :  { %v169_v36 = vadd.f32 %v2030_v34, %v168_v35  ;;  %v2235_v37 = vpop.f32.mrb[1].mxu0 }
 0x21d   :  { %v171_v38 = vpop.f32.mrb[2].mxu0 }
 0x21e   :  { %v172_v39 = vadd.f32 %v2030_v34, %v171_v38  ;;  %v2236_v40 = vpop.f32.mrb[3].mxu0  ;;  %2241 = vmatprep.mubr.msk.f32.mxu1 %vm181_vm2, %v169_v36 }
 0x220   :  { %v2712_v41 = vpack.i.bf16 %v172_v39, %v169_v36 }
 0x222   :  { %2450 = vrot.lane.b32.xlu1 %v2712_v41, %s2580_s2  ;;  %2445 = vrot.lane.b32.xlu0 %v2712_v41, %s2581_s3 }
 0x226   :  { %381 = vrot.lane.b32.xlu1 %v169_v36, %s2582_s25 }
 0x22a   :  { %383 = vrot.lane.b32.xlu1 %v172_v39, %s2582_s25 }
 0x294   :  { %v2451_v42 = vpop.permute.xlu1 %2450  ;;  %v2446_v43 = vpop.permute.xlu0 %2445 }
 0x295   :  { %v2453_v44 = vunpack.i.h.bf16 %v2451_v42  ;;  %v2452_v45 = vunpack.i.l.bf16 %v2451_v42  ;;  %v2448_v46 = vunpack.i.h.bf16 %v2446_v43  ;;  %v2447_v47 = vunpack.i.l.bf16 %v2446_v43 }
 0x297   :  { %v2407_v49 = vpack.c.bf16 %v2453_v44, %v2452_v45  ;;  %v2397_v50 = vpack.c.bf16 %v2448_v46, %v2447_v47 }
 0x298   :  { %v382_v51 = vpop.permute.xlu1 %381 }
 0x299   :  { %2399 = vmatprep.subr.msk.bf16.mxu1 %vm2722_vm3, %v2397_v50  ;;  %2409 = vmatprep.subr.msk.bf16.mxu0 %vm2722_vm3, %v2407_v49 }
 0x29a   :  { %2255 = vmatprep.mubr.msk.f32.mxu0 %vm181_vm2, %v382_v51  ;;  %2402 = vmatpush3.bf16.xpose.msk.msra.mxu1 %vm2722_vm3, %v2397_v50  ;;  %v2486_v51 = vld [vmem:[%s3060_s6] sm:$0xff]  }
 0x29b   :  { %2412 = vmatpush3.bf16.xpose.msk.msra.mxu0 %vm2722_vm3, %v2407_v49 }
 0x29c   :  { %2265 = vmatprep.subr.bf16.mxu0 %v2578_v15  ;;  %v384_v52 = vpop.permute.xlu1 %383 }
 0x2a1   :  { %2242 = vmatmul.mubr.msk.f32.vlgmr.msra.gmra.mrb[0].mxu1 %vm181_vm2, %v172_v39 }
 0x2a2   :  { %2256 = vmatmul.mubr.msk.f32.vlgmr.msra.gmra.mrb[4].mxu0 %vm181_vm2, %v384_v52  ;;  %v2487_v52 = vld [vmem:[%s3060_s6 + $0x8] sm:$0xff]  }
 0x2a3   :  { %2267 = vmatprep.mubr.msk.bf16.mxu0 %vm2579_vm1, %v2578_v15  ;;  %2266 = vmatpush3.bf16.msra.mxu0 %v2487_v52  ;;  %v2497_v52 = vld [vmem:[%s3064_s11 + $0x38] sm:$0xff]  }
 0x2a4   :  { %2277 = vmatprep.subr.bf16.mxu0 %v2578_v15 }
 0x374   :  { %v2243_v53 = vpop.f32.mrb[0].mxu1 }
 0x375   :  { %v266_v55 = vmul.f32 0.25, %v2243_v53  ;;  %v2257_v56 = vpop.f32.mrb[4].mxu0  ;;  %v256_v57 = vpop.f32.mrb[1].mxu1 }
 0x376   :  { %v265_v59 = vmul.f32 0.25, %v256_v57  ;;  %v463_v60 = vpop.f32.mrb[5].mxu0  ;;  %v473_v1 = vmul.f32 0.25, %v2257_v56 }
 0x377   :  { %v472_v61 = vmul.f32 0.25, %v463_v60  ;;  %v268_v62 = vadd.f32 %v266_v55, %v2743_v54 }
 0x378   :  { %v267_v63 = vadd.f32 %v265_v59, %v2748_v58  ;;  %v475_v5 = vadd.f32 %v473_v1, %v2743_v54 }
 0x379   :  { %v272_v0 = vsel %vm181_vm2, %v268_v62, -inf  ;;  %v474_v3 = vadd.f32 %v472_v61, %v2748_v58 }
 0x37a   :  { %273 = vmax.xlane.f32.xlu1 %v272_v0  ;;  %v269_v2 = vsel %vm181_vm2, %v267_v63, -inf  ;;  %v479_v6 = vsel %vm181_vm2, %v475_v5, -inf }
 0x37b   :  { %270 = vmax.xlane.f32.xlu0 %v269_v2  ;;  %v476_v4 = vsel %vm181_vm2, %v474_v3, -inf  ;;  %v2050_v2 = vld [vmem:[%s3061_s7] ss:$0 sm:$0xff] }
 0x37f   :  { %477 = vmax.xlane.f32.xlu0 %v476_v4 }
 0x383   :  { %480 = vmax.xlane.f32.xlu0 %v479_v6 }
 0x407   :  { %v274_v7 = vpop.xlane.xlu1 %273 }
 0x408   :  { %v276_v8 = vsub.f32 %v268_v62, %v274_v7  ;;  %v271_v9 = vpop.xlane.xlu0 %270 }
 0x409   :  { %v275_v10 = vsub.f32 %v267_v63, %v271_v9 }
 0x40a   :  { %v279_v11 = vmul.f32 1.442695, %v276_v8 }
 0x40b   :  { %v277_v12 = vmul.f32 1.442695, %v275_v10 }
 0x40c   :  { %2520 = vpow2.f32 %v279_v11  ;;  %v478_v13 = vpop.xlane.xlu0 %477 }
 0x40d   :  { %2522 = vpow2.f32 %v277_v12  ;;  %v482_v14 = vsub.f32 %v474_v3, %v478_v13 }
 0x40f   :  { %v484_v16 = vmul.f32 1.442695, %v482_v14 }
 0x410   :  { %v481_v17 = vpop.xlane.xlu0 %480 }
 0x411   :  { %2524 = vpow2.f32 %v484_v16  ;;  %v483_v18 = vsub.f32 %v475_v5, %v481_v17 }
 0x413   :  { %v486_v19 = vmul.f32 1.442695, %v483_v18 }
 0x415   :  { %2526 = vpow2.f32 %v486_v19 }
 0x416   :  { %v2521_v20 = vpop.eup %2520 }
 0x417   :  { %v2523_v21 = vpop.eup %2522  ;;  %v284_v22 = vsel %vm181_vm2, %v2521_v20, 0.0 }
 0x418   :  { %285 = vadd.xlane.f32.xlu1 %v284_v22  ;;  %v281_v23 = vsel %vm181_vm2, %v2523_v21, 0.0 }
 0x419   :  { %282 = vadd.xlane.f32.xlu0 %v281_v23 }
 0x41b   :  { %v2525_v24 = vpop.eup %2524 }
 0x41c   :  { %v488_v25 = vsel %vm181_vm2, %v2525_v24, 0.0 }
 0x41d   :  { %489 = vadd.xlane.f32.xlu0 %v488_v25 }
 0x41f   :  { %v2527_v26 = vpop.eup %2526 }
 0x420   :  { %v491_v27 = vsel %vm181_vm2, %v2527_v26, 0.0 }
 0x421   :  { %492 = vadd.xlane.f32.xlu1 %v491_v27 }
 0x432   :  { %2460 = vrot.lane.b32.xlu1 %v2712_v41, %s2583_s1 }
 0x433   :  { %2455 = vrot.lane.b32.xlu0 %v2712_v41, %s2584_s0 }
 0x4a5   :  { %v286_v28 = vpop.xlane.xlu1 %285 }
 0x4a6   :  { %v283_v29 = vpop.xlane.xlu0 %282 }
 0x4a7   :  { %2528 = vrcp.f32 %v283_v29 }
 0x4a8   :  { %2530 = vrcp.f32 %v286_v28 }
 0x4aa   :  { %v490_v30 = vpop.xlane.xlu0 %489 }
 0x4ab   :  { %2532 = vrcp.f32 %v490_v30 }
 0x4ae   :  { %v493_v33 = vpop.xlane.xlu1 %492  ;;  %v2456_v34 = vpop.permute.xlu0 %2455 }
 0x4af   :  { %2534 = vrcp.f32 %v493_v33  ;;  %v2458_v35 = vunpack.i.h.bf16 %v2456_v34  ;;  %v2457_v36 = vunpack.i.l.bf16 %v2456_v34  ;;  %v2052_v34 = vld [vmem:[%s3063_s8] ss:$0 sm:$0xff] }
 0x4b1   :  { %v2529_v37 = vpop.eup %2528  ;;  %v2403_v38 = vpack.c.bf16 %v2458_v35, %v2457_v36 }
 0x4b2   :  { %v2531_v39 = vpop.eup %2530  ;;  %v2461_v40 = vpop.permute.xlu1 %2460  ;;  %v289_v42 = vmul.f32 %v2529_v37, %v2523_v21 }
 0x4b3   :  { %v2463_v43 = vunpack.i.h.bf16 %v2461_v40  ;;  %v2462_v44 = vunpack.i.l.bf16 %v2461_v40  ;;  %2404 = vmatprep.subr.bf16.mxu1 %v2403_v38  ;;  %v290_v45 = vmul.f32 %v2531_v39, %v2521_v20  ;;  %v2053_v39 = vld [vmem:[%s3063_s8 + $0x1] ss:$0 sm:$0xff] }
 0x4b4   :  { %2406 = vmatpush3.bf16.msra.mxu1 %v2403_v38  ;;  %2248 = vmatprep.mubr.msk.f32.mxu1 %vm181_vm2, %v289_v42 }
 0x4b5   :  { %v2533_v41 = vpop.eup %2532  ;;  %v2413_v46 = vpack.c.bf16 %v2463_v43, %v2462_v44 }
 0x4b6   :  { %v496_v47 = vmul.f32 %v2533_v41, %v2525_v24  ;;  %v2489_v24 = vld [vmem:[%s3062_s9 + $0x8] sm:$0xff]   ;;  %v2490_v41 = vld [vmem:[%s3064_s11] sm:$0xff]  }
 0x4b7   :  { %2249 = vmatmul.mubr.msk.f32.vlgmr.msra.gmra.mrb[2].mxu1 %vm181_vm2, %v290_v45  ;;  %2414 = vmatprep.subr.bf16.mxu1 %v2413_v46  ;;  %v2491_v45 = vld [vmem:[%s3064_s11 + $0x8] sm:$0xff]  }
 0x4b8   :  { %2416 = vmatpush3.bf16.msra.mxu1 %v2413_v46  ;;  %2262 = vmatprep.mubr.msk.f32.mxu1 %vm181_vm2, %v496_v47  ;;  %v2492_v46 = vld [vmem:[%s3064_s11 + $0x10] sm:$0xff]   ;;  %v2493_v47 = vld [vmem:[%s3064_s11 + $0x18] sm:$0xff]  }
 0x4b9   :  { %v2535_v49 = vpop.eup %2534  ;;  %2271 = vmatprep.subr.bf16.mxu1 %v2578_v15 }
 0x4ba   :  { %v497_v50 = vmul.f32 %v2535_v49, %v2527_v26  ;;  %v2494_v49 = vld [vmem:[%s3064_s11 + $0x20] sm:$0xff]  }
 0x4bc   :  { %2263 = vmatmul.mubr.msk.f32.vlgmr.msra.gmra.mrb[4].mxu1 %vm181_vm2, %v497_v50  ;;  %v2495_v50 = vld [vmem:[%s3064_s11 + $0x28] sm:$0xff]  }
 0x4bd   :  { %2273 = vmatprep.mubr.msk.bf16.mxu1 %vm2579_vm1, %v2578_v15  ;;  %2272 = vmatpush3.bf16.msra.mxu1 %v2486_v51  ;;  %v2496_v51 = vld [vmem:[%s3064_s11 + $0x30] sm:$0xff]  }
 0x4be   :  { %2285 = vmatprep.subr.bf16.mxu1 %v2578_v15 }
 0x58a   :  { %v2250_v53 = vpop.f32.mrb[2].mxu1 }
 0x58b   :  { %v369_v55 = vpop.f32.mrb[3].mxu1 }
 0x58c   :  { %v380_v56 = vpack.c.bf16 %v2250_v53, %v369_v55  ;;  %v2054_v53 = vld [vmem:[%s3065_s10] ss:$0 sm:$0xff] }
 0x58e   :  { %2274 = vmatmul.mubr.msk.bf16.vlgmr.msra.gmra.mrb[8].mxu1 %vm181_vm2, %v380_v56 }
 0x58f   :  { %v2264_v57 = vpop.f32.mrb[4].mxu1  ;;  %2301 = vmatprep.mubr.msk.bf16.mxu1 %vm2579_vm1, %v2578_v15  ;;  %2286 = vmatpush3.bf16.msra.mxu1 %v2490_v41 }
 0x590   :  { %v576_v59 = vpop.f32.mrb[5].mxu1  ;;  %2287 = vmatprep.subr.bf16.mxu1 %v2578_v15 }
 0x591   :  { %v587_v60 = vpack.c.bf16 %v2264_v57, %v576_v59 }
 0x593   :  { %2268 = vmatmul.mubr.msk.bf16.vlgmr.msra.gmra.mrb[8].mxu0 %vm181_vm2, %v587_v60  ;;  %2288 = vmatpush3.bf16.msra.mxu1 %v2491_v45 }
 0x594   :  { %2281 = vmatprep.mubr.msk.bf16.mxu0 %vm2579_vm1, %v2578_v15  ;;  %2289 = vmatprep.subr.bf16.mxu1 %v2578_v15 }
 0x597   :  { %2290 = vmatpush3.bf16.msra.mxu1 %v2492_v46 }
 0x598   :  { %2291 = vmatprep.subr.bf16.mxu1 %v2578_v15 }
 0x59b   :  { %2292 = vmatpush3.bf16.msra.mxu1 %v2493_v47 }
 0x59c   :  { %2293 = vmatprep.subr.bf16.mxu1 %v2578_v15 }
 0x59f   :  { %2294 = vmatpush3.bf16.msra.mxu1 %v2494_v49  ;;  %v2069_v49 = vld [vmem:[%s3063_s8 + $0x2] ss:$0 sm:$0xff] }
 0x5a0   :  { %2295 = vmatprep.subr.bf16.mxu1 %v2578_v15 }
 0x5a3   :  { %2296 = vmatpush3.bf16.msra.mxu1 %v2495_v50 }
 0x5a4   :  { %2297 = vmatprep.subr.bf16.mxu1 %v2578_v15 }
 0x5a7   :  { %2298 = vmatpush3.bf16.msra.mxu1 %v2496_v51 }
 0x5a8   :  { %2299 = vmatprep.subr.bf16.mxu1 %v2578_v15 }
 0x5ab   :  { %2300 = vmatpush3.bf16.msra.mxu1 %v2497_v52 }
 0x661   :  { %v681_v61 = vpop.f32.mrb[8].mxu1 }
 0x662   :  { %v2275_v62 = vpop.f32.mrb[9].mxu1 }
 0x663   :  { %v684_v63 = vpop.f32.mrb[10].mxu1 }
 0x664   :  { %v2276_v0 = vpop.f32.mrb[11].mxu1 }
 0x666   :  { %v631_v1 = vpop.f32.mrb[8].mxu0 }
 0x667   :  { %v682_v3 = vadd.f32 %v681_v61, %v631_v1  ;;  %v2269_v4 = vpop.f32.mrb[9].mxu0 }
 0x668   :  { %v634_v5 = vpop.f32.mrb[10].mxu0 }
 0x669   :  { %v695_v6 = vadd.f32 %v2050_v2, %v682_v3  ;;  %v685_v7 = vadd.f32 %v684_v63, %v634_v5  ;;  %v2270_v8 = vpop.f32.mrb[11].mxu0 }
 0x66b   :  { %v696_v9 = vadd.f32 %v2050_v2, %v685_v7  ;;  %v697_v10 = vadd.f32 %v695_v6, %v2701_v31 }
 0x66d   :  { %v702_v11 = vsel %vm61_vm0, %v697_v10, 0.0  ;;  %v698_v12 = vadd.f32 %v696_v9, %v2703_v32  ;;  %v2488_v32 = vld [vmem:[%s3062_s9] sm:$0xff]  }
 0x66e   :  { %703 = vadd.xlane.f32.xlu1 %v702_v11  ;;  %2278 = vmatpush3.bf16.msra.mxu0 %v2488_v32 }
 0x66f   :  { %v705_v13 = vsel %vm61_vm0, %v698_v12, 0.0  ;;  %2279 = vmatprep.subr.bf16.mxu0 %v2578_v15 }
 0x670   :  { %706 = vadd.xlane.f32.xlu0 %v705_v13 }
 0x672   :  { %2280 = vmatpush3.bf16.msra.mxu0 %v2489_v24 }
 0x673   :  { %2305 = vmatprep.subr.bf16.mxu0 %v2578_v15 }
 0x6fb   :  { %v704_v14 = vpop.xlane.xlu1 %703 }
 0x6fc   :  { %v708_v16 = vmul.f32 0.03125, %v704_v14 }
 0x6fd   :  { %v707_v17 = vpop.xlane.xlu0 %706 }
 0x6fe   :  { %v710_v18 = vsub.f32 %v697_v10, %v708_v16  ;;  %v709_v19 = vmul.f32 0.03125, %v707_v17 }
 0x700   :  { %v711_v20 = vsub.f32 %v698_v12, %v709_v19  ;;  %v712_v21 = vmul.f32 %v710_v18, %v710_v18 }
 0x702   :  { %v714_v22 = vsel %vm61_vm0, %v712_v21, 0.0  ;;  %v713_v23 = vmul.f32 %v711_v20, %v711_v20 }
 0x703   :  { %715 = vadd.xlane.f32.xlu0 %v714_v22 }
 0x704   :  { %v717_v31 = vsel %vm61_vm0, %v713_v23, 0.0 }
 0x705   :  { %718 = vadd.xlane.f32.xlu1 %v717_v31 }
 0x790   :  { %v716_v25 = vpop.xlane.xlu0 %715 }
 0x791   :  { %v720_v26 = vmul.f32 0.03125, %v716_v25 }
 0x792   :  { %v719_v27 = vpop.xlane.xlu1 %718 }
 0x793   :  { %v722_v28 = vadd.f32 1e-12, %v720_v26  ;;  %v721_v29 = vmul.f32 0.03125, %v719_v27 }
 0x795   :  { %2536 = vrsqrt.f32 %v722_v28  ;;  %v723_v30 = vadd.f32 1e-12, %v721_v29 }
 0x797   :  { %2538 = vrsqrt.f32 %v723_v30 }
 0x79f   :  { %v2537_v33 = vpop.eup %2536 }
 0x7a0   :  { %v726_v35 = vmul.f32 %v2537_v33, %v710_v18  ;;  %v2058_v18 = vld [vmem:[%s3066_s12] ss:$0 sm:$0xff] }
 0x7a1   :  { %v2539_v36 = vpop.eup %2538 }
 0x7a2   :  { %v734_v37 = vmul.f32 %v2052_v34, %v726_v35  ;;  %v727_v38 = vmul.f32 %v2539_v36, %v711_v20 }
 0x7a4   :  { %v735_v40 = vmul.f32 %v2052_v34, %v727_v38  ;;  %v2810_v42 = vadd.f32 %v2053_v39, %v734_v37 }
 0x7a6   :  { %v2812_v43 = vadd.f32 %v2053_v39, %v735_v40  ;;  %v2498_v39 = vld [vmem:[%s3077_s30 + $0x10] sm:$0xff]   ;;  %v2499_v40 = vld [vmem:[%s3077_s30 + $0x18] sm:$0xff]  }
 0x7a8   :  { %v744_v44 = vpack.c.bf16 %v2812_v43, %v2810_v42 }
 0x7aa   :  { %2282 = vmatmul.mubr.msk.bf16.vlgmr.msra.gmra.mrb[12].mxu0 %vm61_vm0, %v744_v44 }
 0x7ab   :  { %2309 = vmatprep.mubr.msk.bf16.mxu0 %vm2579_vm1, %v2578_v15  ;;  %2306 = vmatpush3.bf16.msra.mxu0 %v2498_v39 }
 0x7ac   :  { %2307 = vmatprep.subr.bf16.mxu0 %v2578_v15 }
 0x7af   :  { %2308 = vmatpush3.bf16.msra.mxu0 %v2499_v40 }
 0x87d   :  { %v805_v55 = vpop.f32.mrb[12].mxu0 }
 0x87e   :  { %v806_v56 = vadd.f32 %v2054_v53, %v805_v55  ;;  %v2283_v57 = vpop.f32.mrb[13].mxu0  ;;  %v2070_v55 = vld [vmem:[%s3063_s8 + $0x3] ss:$0 sm:$0xff] }
 0x87f   :  { %v808_v59 = vpop.f32.mrb[14].mxu0 }
 0x880   :  { %v814_v60 = vmul.f32 0.044715, %v806_v56  ;;  %v809_v61 = vadd.f32 %v2054_v53, %v808_v59  ;;  %v2284_v62 = vpop.f32.mrb[15].mxu0  ;;  %v812_v11 = vmul.f32 0.5, %v806_v56 }
 0x882   :  { %v816_v63 = vmul.f32 %v814_v60, %v806_v56  ;;  %v815_v0 = vmul.f32 0.044715, %v809_v61  ;;  %v813_v12 = vmul.f32 0.5, %v809_v61 }
 0x884   :  { %v818_v1 = vmul.f32 %v816_v63, %v806_v56  ;;  %v817_v2 = vmul.f32 %v815_v0, %v809_v61 }
 0x886   :  { %v820_v3 = vadd.f32 %v818_v1, %v806_v56  ;;  %v819_v4 = vmul.f32 %v817_v2, %v809_v61 }
 0x888   :  { %v822_v5 = vmul.f32 0.7978846, %v820_v3  ;;  %v821_v6 = vadd.f32 %v819_v4, %v809_v61  ;;  %v2076_v61 = vld [vmem:[%s3058_s5 + $0x1] ss:$0 sm:$0xff] }
 0x88a   :  { %2540 = vtanh.f32 %v822_v5  ;;  %v823_v7 = vmul.f32 0.7978846, %v821_v6 }
 0x88c   :  { %2542 = vtanh.f32 %v823_v7 }
 0x894   :  { %v2541_v8 = vpop.eup %2540 }
 0x895   :  { %v826_v9 = vadd.f32 1.0, %v2541_v8 }
 0x896   :  { %v2543_v10 = vpop.eup %2542 }
 0x897   :  { %v827_v13 = vadd.f32 1.0, %v2543_v10  ;;  %v828_v14 = vmul.f32 %v826_v9, %v812_v11 }
 0x899   :  { %v829_v16 = vmul.f32 %v827_v13, %v813_v12 }
 0x89b   :  { %v830_v17 = vpack.c.bf16 %v829_v16, %v828_v14 }
 0x89d   :  { %2302 = vmatmul.mubr.bf16.vlgmr.msra.gmra.mrb[12].mxu1 %v830_v17 }
 0x970   :  { %v936_v19 = vpop.f32.mrb[12].mxu1 }
 0x971   :  { %v937_v20 = vadd.f32 %v2058_v18, %v936_v19  ;;  %v2303_v21 = vpop.f32.mrb[13].mxu1 }
 0x972   :  { %v939_v22 = vpop.f32.mrb[14].mxu1 }
 0x973   :  { %v940_v23 = vadd.f32 %v2058_v18, %v939_v22  ;;  %v2304_v31 = vpop.f32.mrb[15].mxu1  ;;  %v943_v32 = vadd.f32 %v937_v20, %v2810_v42 }
 0x975   :  { %v949_v24 = vsel %vm61_vm0, %v943_v32, 0.0  ;;  %v944_v25 = vadd.f32 %v940_v23, %v2812_v43 }
 0x976   :  { %950 = vadd.xlane.f32.xlu0 %v949_v24 }
 0x977   :  { %v952_v26 = vsel %vm61_vm0, %v944_v25, 0.0 }
 0x978   :  { %953 = vadd.xlane.f32.xlu1 %v952_v26 }
 0xa03   :  { %v951_v27 = vpop.xlane.xlu0 %950 }
 0xa04   :  { %v955_v28 = vmul.f32 0.03125, %v951_v27 }
 0xa05   :  { %v954_v29 = vpop.xlane.xlu1 %953 }
 0xa06   :  { %v957_v30 = vsub.f32 %v943_v32, %v955_v28  ;;  %v956_v33 = vmul.f32 0.03125, %v954_v29 }
 0xa08   :  { %v958_v34 = vsub.f32 %v944_v25, %v956_v33  ;;  %v959_v35 = vmul.f32 %v957_v30, %v957_v30 }
 0xa0a   :  { %v961_v36 = vsel %vm61_vm0, %v959_v35, 0.0  ;;  %v960_v37 = vmul.f32 %v958_v34, %v958_v34 }
 0xa0b   :  { %962 = vadd.xlane.f32.xlu0 %v961_v36 }
 0xa0c   :  { %v964_v38 = vsel %vm61_vm0, %v960_v37, 0.0 }
 0xa0d   :  { %965 = vadd.xlane.f32.xlu1 %v964_v38 }
 0xa98   :  { %v963_v42 = vpop.xlane.xlu0 %962 }
 0xa99   :  { %v967_v43 = vmul.f32 0.03125, %v963_v42 }
 0xa9a   :  { %v966_v44 = vpop.xlane.xlu1 %965 }
 0xa9b   :  { %v969_v41 = vadd.f32 1e-12, %v967_v43  ;;  %v968_v45 = vmul.f32 0.03125, %v966_v44 }
 0xa9d   :  { %2544 = vrsqrt.f32 %v969_v41  ;;  %v970_v46 = vadd.f32 1e-12, %v968_v45 }
 0xa9f   :  { %2546 = vrsqrt.f32 %v970_v46 }
 0xaa7   :  { %v2545_v47 = vpop.eup %2544 }
 0xaa8   :  { %v973_v50 = vmul.f32 %v2545_v47, %v957_v30 }
 0xaa9   :  { %v2547_v51 = vpop.eup %2546 }
 0xaaa   :  { %v981_v52 = vmul.f32 %v2069_v49, %v973_v50  ;;  %v974_v53 = vmul.f32 %v2547_v51, %v958_v34 }
 0xaac   :  { %v982_v56 = vmul.f32 %v2069_v49, %v974_v53  ;;  %v2875_v57 = vadd.f32 %v2070_v55, %v981_v52 }
 0xaae   :  { %v2877_v59 = vadd.f32 %v2070_v55, %v982_v56 }
 0xab0   :  { %v991_v60 = vpack.c.bf16 %v2877_v59, %v2875_v57 }
 0xab2   :  { %2310 = vmatmul.mubr.msk.bf16.vlgmr.msra.gmra.mrb[16].mxu0 %vm61_vm0, %v991_v60 }
 0xb85   :  { %v1054_v62 = vpop.f32.mrb[16].mxu0 }
 0xb86   :  { %v1055_v63 = vadd.f32 %v2076_v61, %v1054_v62  ;;  %v2311_v0 = vpop.f32.mrb[17].mxu0 }
 0xb87   :  { %v1057_v1 = vpop.f32.mrb[18].mxu0 }
 0xb88   :  { %v1058_v2 = vadd.f32 %v2076_v61, %v1057_v1  ;;  %v2312_v3 = vpop.f32.mrb[19].mxu0  ;;  %2317 = vmatprep.mubr.msk.f32.mxu0 %vm181_vm2, %v1055_v63 }
 0xb8a   :  { %v2886_v4 = vpack.i.bf16 %v1058_v2, %v1055_v63 }
 0xb8c   :  { %2470 = vrot.lane.b32.xlu1 %v2886_v4, %s2580_s2  ;;  %2465 = vrot.lane.b32.xlu0 %v2886_v4, %s2581_s3 }
 0xb90   :  { %1267 = vrot.lane.b32.xlu1 %v1055_v63, %s2582_s25 }
 0xb94   :  { %1269 = vrot.lane.b32.xlu1 %v1058_v2, %s2582_s25 }
 0xbfe   :  { %v2471_v5 = vpop.permute.xlu1 %2470  ;;  %v2466_v6 = vpop.permute.xlu0 %2465 }
 0xbff   :  { %v2473_v7 = vunpack.i.h.bf16 %v2471_v5  ;;  %v2472_v8 = vunpack.i.l.bf16 %v2471_v5  ;;  %v2468_v9 = vunpack.i.h.bf16 %v2466_v6  ;;  %v2467_v10 = vunpack.i.l.bf16 %v2466_v6 }
 0xc01   :  { %v2427_v11 = vpack.c.bf16 %v2473_v7, %v2472_v8  ;;  %v2417_v12 = vpack.c.bf16 %v2468_v9, %v2467_v10  ;;  %v2500_v10 = vld [vmem:[%s3060_s6 + $0x10] sm:$0xff]  }
 0xc02   :  { %v1268_v13 = vpop.permute.xlu1 %1267 }
 0xc03   :  { %2419 = vmatprep.subr.msk.bf16.mxu0 %vm2722_vm3, %v2417_v12  ;;  %2429 = vmatprep.subr.msk.bf16.mxu1 %vm2722_vm3, %v2427_v11 }
 0xc04   :  { %2331 = vmatprep.mubr.msk.f32.mxu1 %vm181_vm2, %v1268_v13  ;;  %2422 = vmatpush3.bf16.xpose.msk.msra.mxu0 %vm2722_vm3, %v2417_v12 }
 0xc05   :  { %2432 = vmatpush3.bf16.xpose.msk.msra.mxu1 %vm2722_vm3, %v2427_v11  ;;  %v2501_v11 = vld [vmem:[%s3060_s6 + $0x18] sm:$0xff]  }
 0xc06   :  { %2341 = vmatprep.subr.bf16.mxu1 %v2578_v15  ;;  %v1270_v14 = vpop.permute.xlu1 %1269 }
 0xc0b   :  { %2318 = vmatmul.mubr.msk.f32.vlgmr.msra.gmra.mrb[6].mxu0 %vm181_vm2, %v1058_v2 }
 0xc0c   :  { %2332 = vmatmul.mubr.msk.f32.vlgmr.msra.gmra.mrb[6].mxu1 %vm181_vm2, %v1270_v14 }
 0xc0d   :  { %2343 = vmatprep.mubr.msk.bf16.mxu1 %vm2579_vm1, %v2578_v15  ;;  %2342 = vmatpush3.bf16.msra.mxu1 %v2501_v11 }
 0xc0e   :  { %2353 = vmatprep.subr.bf16.mxu1 %v2578_v15 }
 0xcde   :  { %v2319_v16 = vpop.f32.mrb[6].mxu0 }
 0xcdf   :  { %v1151_v17 = vmul.f32 0.25, %v2319_v16  ;;  %v2333_v18 = vpop.f32.mrb[6].mxu1  ;;  %v1141_v19 = vpop.f32.mrb[7].mxu0 }
 0xce0   :  { %v1150_v20 = vmul.f32 0.25, %v1141_v19  ;;  %v1349_v21 = vpop.f32.mrb[7].mxu1  ;;  %v1359_v32 = vmul.f32 0.25, %v2333_v18 }
 0xce1   :  { %v1358_v22 = vmul.f32 0.25, %v1349_v21  ;;  %v1153_v48 = vadd.f32 %v1151_v17, %v2743_v54 }
 0xce2   :  { %v1152_v23 = vadd.f32 %v1150_v20, %v2748_v58  ;;  %v1361_v27 = vadd.f32 %v1359_v32, %v2743_v54 }
 0xce3   :  { %v1157_v31 = vsel %vm181_vm2, %v1153_v48, -inf  ;;  %v1360_v25 = vadd.f32 %v1358_v22, %v2748_v58 }
 0xce4   :  { %1158 = vmax.xlane.f32.xlu1 %v1157_v31  ;;  %v1154_v24 = vsel %vm181_vm2, %v1152_v23, -inf  ;;  %v1365_v28 = vsel %vm181_vm2, %v1361_v27, -inf }
 0xce5   :  { %1155 = vmax.xlane.f32.xlu0 %v1154_v24  ;;  %v1362_v26 = vsel %vm181_vm2, %v1360_v25, -inf }
 0xce9   :  { %1363 = vmax.xlane.f32.xlu0 %v1362_v26 }
 0xced   :  { %1366 = vmax.xlane.f32.xlu0 %v1365_v28 }
 0xd71   :  { %v1159_v29 = vpop.xlane.xlu1 %1158 }
 0xd72   :  { %v1161_v30 = vsub.f32 %v1153_v48, %v1159_v29  ;;  %v1156_v33 = vpop.xlane.xlu0 %1155 }
 0xd73   :  { %v1160_v34 = vsub.f32 %v1152_v23, %v1156_v33  ;;  %v2101_v23 = vld [vmem:[%s3061_s7 + $0x1] ss:$0 sm:$0xff] }
 0xd74   :  { %v1164_v35 = vmul.f32 1.442695, %v1161_v30 }
 0xd75   :  { %v1162_v36 = vmul.f32 1.442695, %v1160_v34 }
 0xd76   :  { %2548 = vpow2.f32 %v1164_v35  ;;  %v1364_v37 = vpop.xlane.xlu0 %1363 }
 0xd77   :  { %2550 = vpow2.f32 %v1162_v36  ;;  %v1368_v38 = vsub.f32 %v1360_v25, %v1364_v37 }
 0xd79   :  { %v1370_v58 = vmul.f32 1.442695, %v1368_v38 }
 0xd7a   :  { %v1367_v39 = vpop.xlane.xlu0 %1366 }
 0xd7b   :  { %2552 = vpow2.f32 %v1370_v58  ;;  %v1369_v40 = vsub.f32 %v1361_v27, %v1367_v39 }
 0xd7d   :  { %v1372_v42 = vmul.f32 1.442695, %v1369_v40 }
 0xd7f   :  { %2554 = vpow2.f32 %v1372_v42 }
 0xd80   :  { %v2549_v54 = vpop.eup %2548 }
 0xd81   :  { %v2551_v43 = vpop.eup %2550  ;;  %v1169_v44 = vsel %vm181_vm2, %v2549_v54, 0.0 }
 0xd82   :  { %1170 = vadd.xlane.f32.xlu1 %v1169_v44  ;;  %v1166_v41 = vsel %vm181_vm2, %v2551_v43, 0.0 }
 0xd83   :  { %1167 = vadd.xlane.f32.xlu0 %v1166_v41 }
 0xd85   :  { %v2553_v45 = vpop.eup %2552 }
 0xd86   :  { %v1374_v46 = vsel %vm181_vm2, %v2553_v45, 0.0 }
 0xd87   :  { %1375 = vadd.xlane.f32.xlu0 %v1374_v46 }
 0xd89   :  { %v2555_v47 = vpop.eup %2554 }
 0xd8a   :  { %v1377_v49 = vsel %vm181_vm2, %v2555_v47, 0.0 }
 0xd8b   :  { %1378 = vadd.xlane.f32.xlu1 %v1377_v49 }
 0xd9c   :  { %2480 = vrot.lane.b32.xlu1 %v2886_v4, %s2583_s1 }
 0xd9d   :  { %2475 = vrot.lane.b32.xlu0 %v2886_v4, %s2584_s0 }
 0xe0f   :  { %v1171_v50 = vpop.xlane.xlu1 %1170 }
 0xe10   :  { %v1168_v51 = vpop.xlane.xlu0 %1167 }
 0xe11   :  { %2556 = vrcp.f32 %v1168_v51  ;;  %v2104_v51 = vld [vmem:[%s3063_s8 + $0x4] ss:$0 sm:$0xff] }
 0xe12   :  { %2558 = vrcp.f32 %v1171_v50 }
 0xe14   :  { %v1376_v52 = vpop.xlane.xlu0 %1375 }
 0xe15   :  { %2560 = vrcp.f32 %v1376_v52 }
 0xe18   :  { %v1379_v53 = vpop.xlane.xlu1 %1378  ;;  %v2476_v55 = vpop.permute.xlu0 %2475 }
 0xe19   :  { %2562 = vrcp.f32 %v1379_v53  ;;  %v2478_v56 = vunpack.i.h.bf16 %v2476_v55  ;;  %v2477_v60 = vunpack.i.l.bf16 %v2476_v55 }
 0xe1b   :  { %v2557_v61 = vpop.eup %2556  ;;  %v2423_v62 = vpack.c.bf16 %v2478_v56, %v2477_v60  ;;  %v2105_v60 = vld [vmem:[%s3063_s8 + $0x5] ss:$0 sm:$0xff] }
 0xe1c   :  { %v2559_v63 = vpop.eup %2558  ;;  %v2481_v0 = vpop.permute.xlu1 %2480  ;;  %v1174_v1 = vmul.f32 %v2557_v61, %v2551_v43  ;;  %v2503_v43 = vld [vmem:[%s3062_s9 + $0x18] sm:$0xff]  }
 0xe1d   :  { %v2483_v2 = vunpack.i.h.bf16 %v2481_v0  ;;  %v2482_v3 = vunpack.i.l.bf16 %v2481_v0  ;;  %2424 = vmatprep.subr.bf16.mxu0 %v2423_v62  ;;  %v1175_v5 = vmul.f32 %v2559_v63, %v2549_v54 }
 0xe1e   :  { %2426 = vmatpush3.bf16.msra.mxu0 %v2423_v62  ;;  %2324 = vmatprep.mubr.msk.f32.mxu0 %vm181_vm2, %v1174_v1  ;;  %v2504_v1 = vld [vmem:[%s3064_s11 + $0x40] sm:$0xff]  }
 0xe1f   :  { %v2561_v4 = vpop.eup %2560  ;;  %v2433_v6 = vpack.c.bf16 %v2483_v2, %v2482_v3  ;;  %v2505_v2 = vld [vmem:[%s3064_s11 + $0x48] sm:$0xff]   ;;  %v2506_v3 = vld [vmem:[%s3064_s11 + $0x50] sm:$0xff]  }
 0xe20   :  { %v1382_v7 = vmul.f32 %v2561_v4, %v2553_v45  ;;  %v2507_v4 = vld [vmem:[%s3064_s11 + $0x58] sm:$0xff]  }
 0xe21   :  { %2325 = vmatmul.mubr.msk.f32.vlgmr.msra.gmra.mrb[20].mxu0 %vm181_vm2, %v1175_v5  ;;  %2434 = vmatprep.subr.bf16.mxu0 %v2433_v6  ;;  %v2508_v5 = vld [vmem:[%s3064_s11 + $0x60] sm:$0xff]  }
 0xe22   :  { %2436 = vmatpush3.bf16.msra.mxu0 %v2433_v6  ;;  %2338 = vmatprep.mubr.msk.f32.mxu0 %vm181_vm2, %v1382_v7  ;;  %v2509_v6 = vld [vmem:[%s3064_s11 + $0x68] sm:$0xff]   ;;  %v2510_v7 = vld [vmem:[%s3064_s11 + $0x70] sm:$0xff]  }
 0xe23   :  { %v2563_v8 = vpop.eup %2562  ;;  %2347 = vmatprep.subr.bf16.mxu0 %v2578_v15 }
 0xe24   :  { %v1383_v9 = vmul.f32 %v2563_v8, %v2555_v47  ;;  %v2511_v8 = vld [vmem:[%s3064_s11 + $0x78] sm:$0xff]  }
 0xe26   :  { %2339 = vmatmul.mubr.msk.f32.vlgmr.msra.gmra.mrb[22].mxu0 %vm181_vm2, %v1383_v9  ;;  %v2111_v9 = vld [vmem:[%s3065_s10 + $0x1] ss:$0 sm:$0xff] }
 0xe27   :  { %2349 = vmatprep.mubr.msk.bf16.mxu0 %vm2579_vm1, %v2578_v15  ;;  %2348 = vmatpush3.bf16.msra.mxu0 %v2500_v10 }
 0xe28   :  { %2361 = vmatprep.subr.bf16.mxu0 %v2578_v15 }
 0xef4   :  { %v2326_v12 = vpop.f32.mrb[20].mxu0 }
 0xef5   :  { %v1254_v13 = vpop.f32.mrb[21].mxu0 }
 0xef6   :  { %v1266_v14 = vpack.c.bf16 %v2326_v12, %v1254_v13 }
 0xef8   :  { %2350 = vmatmul.mubr.msk.bf16.vlgmr.msra.gmra.mrb[24].mxu0 %vm181_vm2, %v1266_v14 }
 0xef9   :  { %v2340_v16 = vpop.f32.mrb[22].mxu0  ;;  %2377 = vmatprep.mubr.msk.bf16.mxu0 %vm2579_vm1, %v2578_v15  ;;  %2362 = vmatpush3.bf16.msra.mxu0 %v2504_v1 }
 0xefa   :  { %v1462_v17 = vpop.f32.mrb[23].mxu0  ;;  %2363 = vmatprep.subr.bf16.mxu0 %v2578_v15 }
 0xefb   :  { %v1473_v18 = vpack.c.bf16 %v2340_v16, %v1462_v17 }
 0xefd   :  { %2344 = vmatmul.mubr.msk.bf16.vlgmr.msra.gmra.mrb[16].mxu1 %vm181_vm2, %v1473_v18  ;;  %2364 = vmatpush3.bf16.msra.mxu0 %v2505_v2 }
 0xefe   :  { %2357 = vmatprep.mubr.msk.bf16.mxu1 %vm2579_vm1, %v2578_v15  ;;  %2365 = vmatprep.subr.bf16.mxu0 %v2578_v15 }
 0xf01   :  { %2366 = vmatpush3.bf16.msra.mxu0 %v2506_v3 }
 0xf02   :  { %2367 = vmatprep.subr.bf16.mxu0 %v2578_v15 }
 0xf05   :  { %2368 = vmatpush3.bf16.msra.mxu0 %v2507_v4  ;;  %v2143_v4 = vld [vmem:[%s3063_s8 + $0x6] ss:$0 sm:$0xff] }
 0xf06   :  { %2369 = vmatprep.subr.bf16.mxu0 %v2578_v15 }
 0xf09   :  { %2370 = vmatpush3.bf16.msra.mxu0 %v2508_v5 }
 0xf0a   :  { %2371 = vmatprep.subr.bf16.mxu0 %v2578_v15 }
 0xf0d   :  { %2372 = vmatpush3.bf16.msra.mxu0 %v2509_v6 }
 0xf0e   :  { %2373 = vmatprep.subr.bf16.mxu0 %v2578_v15 }
 0xf11   :  { %2374 = vmatpush3.bf16.msra.mxu0 %v2510_v7 }
 0xf12   :  { %2375 = vmatprep.subr.bf16.mxu0 %v2578_v15 }
 0xf15   :  { %2376 = vmatpush3.bf16.msra.mxu0 %v2511_v8  ;;  %v2144_v8 = vld [vmem:[%s3063_s8 + $0x7] ss:$0 sm:$0xff] }
 0xfcb   :  { %v1567_v19 = vpop.f32.mrb[24].mxu0 }
 0xfcc   :  { %v2351_v20 = vpop.f32.mrb[25].mxu0 }
 0xfcd   :  { %v1570_v21 = vpop.f32.mrb[26].mxu0 }
 0xfce   :  { %v2352_v22 = vpop.f32.mrb[27].mxu0 }
 0xfd0   :  { %v1517_v48 = vpop.f32.mrb[16].mxu1 }
 0xfd1   :  { %v1568_v31 = vadd.f32 %v1567_v19, %v1517_v48  ;;  %v2345_v32 = vpop.f32.mrb[17].mxu1 }
 0xfd2   :  { %v1520_v24 = vpop.f32.mrb[18].mxu1 }
 0xfd3   :  { %v1582_v25 = vadd.f32 %v2101_v23, %v1568_v31  ;;  %v1571_v26 = vadd.f32 %v1570_v21, %v1520_v24  ;;  %v2346_v27 = vpop.f32.mrb[19].mxu1 }
 0xfd5   :  { %v1583_v28 = vadd.f32 %v2101_v23, %v1571_v26  ;;  %v1584_v29 = vadd.f32 %v1582_v25, %v2875_v57 }
 0xfd7   :  { %v1590_v30 = vsel %vm61_vm0, %v1584_v29, 0.0  ;;  %v1585_v33 = vadd.f32 %v1583_v28, %v2877_v59  ;;  %v2502_v59 = vld [vmem:[%s3062_s9 + $0x10] sm:$0xff]  }
 0xfd8   :  { %1591 = vadd.xlane.f32.xlu1 %v1590_v30  ;;  %2354 = vmatpush3.bf16.msra.mxu1 %v2502_v59 }
 0xfd9   :  { %v1593_v34 = vsel %vm61_vm0, %v1585_v33, 0.0  ;;  %2355 = vmatprep.subr.bf16.mxu1 %v2578_v15 }
 0xfda   :  { %1594 = vadd.xlane.f32.xlu0 %v1593_v34 }
 0xfdc   :  { %2356 = vmatpush3.bf16.msra.mxu1 %v2503_v43 }
 0xfdd   :  { %2381 = vmatprep.subr.bf16.mxu1 %v2578_v15 }
0x1065   :  { %v1592_v35 = vpop.xlane.xlu1 %1591 }
0x1066   :  { %v1596_v36 = vmul.f32 0.03125, %v1592_v35  ;;  %v2132_v35 = vld [vmem:[%s3066_s12 + $0x1] ss:$0 sm:$0xff] }
0x1067   :  { %v1595_v37 = vpop.xlane.xlu0 %1594 }
0x1068   :  { %v1598_v38 = vsub.f32 %v1584_v29, %v1596_v36  ;;  %v1597_v58 = vmul.f32 0.03125, %v1595_v37 }
0x106a   :  { %v1599_v39 = vsub.f32 %v1585_v33, %v1597_v58  ;;  %v1600_v40 = vmul.f32 %v1598_v38, %v1598_v38 }
0x106c   :  { %v1602_v42 = vsel %vm61_vm0, %v1600_v40, 0.0  ;;  %v1601_v54 = vmul.f32 %v1599_v39, %v1599_v39 }
0x106d   :  { %1603 = vadd.xlane.f32.xlu0 %v1602_v42 }
0x106e   :  { %v1605_v57 = vsel %vm61_vm0, %v1601_v54, 0.0 }
0x106f   :  { %1606 = vadd.xlane.f32.xlu1 %v1605_v57 }
0x10fa   :  { %v1604_v44 = vpop.xlane.xlu0 %1603 }
0x10fb   :  { %v1608_v41 = vmul.f32 0.03125, %v1604_v44 }
0x10fc   :  { %v1607_v45 = vpop.xlane.xlu1 %1606 }
0x10fd   :  { %v1610_v46 = vadd.f32 1e-12, %v1608_v41  ;;  %v1609_v47 = vmul.f32 0.03125, %v1607_v45 }
0x10ff   :  { %2564 = vrsqrt.f32 %v1610_v46  ;;  %v1611_v49 = vadd.f32 1e-12, %v1609_v47 }
0x1101   :  { %2566 = vrsqrt.f32 %v1611_v49 }
0x1109   :  { %v2565_v50 = vpop.eup %2564 }
0x110a   :  { %v1614_v52 = vmul.f32 %v2565_v50, %v1598_v38 }
0x110b   :  { %v2567_v53 = vpop.eup %2566 }
0x110c   :  { %v1622_v55 = vmul.f32 %v2104_v51, %v1614_v52  ;;  %v1615_v56 = vmul.f32 %v2567_v53, %v1599_v39  ;;  %v2512_v53 = vld [vmem:[%s3067_s13] sm:$0xff]  }
0x110e   :  { %v1623_v61 = vmul.f32 %v2104_v51, %v1615_v56  ;;  %v2968_v62 = vadd.f32 %v2105_v60, %v1622_v55  ;;  %v2513_v55 = vld [vmem:[%s3067_s13 + $0x8] sm:$0xff]  }
0x1110   :  { %v2970_v63 = vadd.f32 %v2105_v60, %v1623_v61 }
0x1112   :  { %v1632_v0 = vpack.c.bf16 %v2970_v63, %v2968_v62 }
0x1114   :  { %2358 = vmatmul.mubr.msk.bf16.vlgmr.msra.gmra.mrb[20].mxu1 %vm61_vm0, %v1632_v0 }
0x1115   :  { %2385 = vmatprep.mubr.msk.bf16.mxu1 %vm2579_vm1, %v2578_v15  ;;  %2382 = vmatpush3.bf16.msra.mxu1 %v2512_v53 }
0x1116   :  { %2383 = vmatprep.subr.bf16.mxu1 %v2578_v15 }
0x1119   :  { %2384 = vmatpush3.bf16.msra.mxu1 %v2513_v55 }
0x111a   :  { %2389 = vmatprep.subr.bf16.mxu1 %v2578_v15 }
0x11e7   :  { %v1695_v10 = vpop.f32.mrb[20].mxu1 }
0x11e8   :  { %v1696_v11 = vadd.f32 %v2111_v9, %v1695_v10  ;;  %v2359_v12 = vpop.f32.mrb[21].mxu1 }
0x11e9   :  { %v1698_v13 = vpop.f32.mrb[22].mxu1 }
0x11ea   :  { %v1704_v14 = vmul.f32 0.044715, %v1696_v11  ;;  %v1699_v16 = vadd.f32 %v2111_v9, %v1698_v13  ;;  %v2360_v17 = vpop.f32.mrb[23].mxu1  ;;  %v1702_v27 = vmul.f32 0.5, %v1696_v11 }
0x11eb   :  { %v2145_v17 = vld [vmem:[%s3069_s14] ss:$0 sm:$0xff] }
0x11ec   :  { %v1706_v18 = vmul.f32 %v1704_v14, %v1696_v11  ;;  %v1705_v19 = vmul.f32 0.044715, %v1699_v16  ;;  %v1703_v28 = vmul.f32 0.5, %v1699_v16  ;;  %v2514_v14 = vld [vmem:[%s3068_s15] sm:$0xff]  }
0x11ee   :  { %v1708_v20 = vmul.f32 %v1706_v18, %v1696_v11  ;;  %v1707_v21 = vmul.f32 %v1705_v19, %v1699_v16 }
0x11f0   :  { %v1710_v22 = vadd.f32 %v1708_v20, %v1696_v11  ;;  %v1709_v48 = vmul.f32 %v1707_v21, %v1699_v16 }
0x11f2   :  { %v1712_v23 = vmul.f32 0.7978846, %v1710_v22  ;;  %v1711_v31 = vadd.f32 %v1709_v48, %v1699_v16  ;;  %v2515_v16 = vld [vmem:[%s3068_s15 + $0x8] sm:$0xff]  }
0x11f4   :  { %2568 = vtanh.f32 %v1712_v23  ;;  %v1713_v32 = vmul.f32 0.7978846, %v1711_v31 }
0x11f6   :  { %2570 = vtanh.f32 %v1713_v32 }
0x11fe   :  { %v2569_v24 = vpop.eup %2568 }
0x11ff   :  { %v1716_v25 = vadd.f32 1.0, %v2569_v24 }
0x1200   :  { %v2571_v26 = vpop.eup %2570 }
0x1201   :  { %v1717_v29 = vadd.f32 1.0, %v2571_v26  ;;  %v1718_v30 = vmul.f32 %v1716_v25, %v1702_v27 }
0x1203   :  { %v1719_v33 = vmul.f32 %v1717_v29, %v1703_v28 }
0x1205   :  { %v1720_v34 = vpack.c.bf16 %v1719_v33, %v1718_v30 }
0x1207   :  { %2378 = vmatmul.mubr.bf16.vlgmr.msra.gmra.mrb[28].mxu0 %v1720_v34 }
0x12da   :  { %v1828_v36 = vpop.f32.mrb[28].mxu0 }
0x12db   :  { %v1829_v37 = vadd.f32 %v2132_v35, %v1828_v36  ;;  %v2379_v38 = vpop.f32.mrb[29].mxu0 }
0x12dc   :  { %v1831_v58 = vpop.f32.mrb[30].mxu0 }
0x12dd   :  { %v1832_v39 = vadd.f32 %v2132_v35, %v1831_v58  ;;  %v2380_v40 = vpop.f32.mrb[31].mxu0  ;;  %v1835_v42 = vadd.f32 %v1829_v37, %v2968_v62 }
0x12df   :  { %v1841_v54 = vsel %vm61_vm0, %v1835_v42, 0.0  ;;  %v1836_v57 = vadd.f32 %v1832_v39, %v2970_v63 }
0x12e0   :  { %1842 = vadd.xlane.f32.xlu1 %v1841_v54 }
0x12e1   :  { %v1844_v59 = vsel %vm61_vm0, %v1836_v57, 0.0 }
0x12e2   :  { %1845 = vadd.xlane.f32.xlu0 %v1844_v59 }
0x136d   :  { %v1843_v43 = vpop.xlane.xlu1 %1842 }
0x136e   :  { %v1847_v44 = vmul.f32 0.03125, %v1843_v43 }
0x136f   :  { %v1846_v41 = vpop.xlane.xlu0 %1845 }
0x1370   :  { %v1849_v45 = vsub.f32 %v1835_v42, %v1847_v44  ;;  %v1848_v46 = vmul.f32 0.03125, %v1846_v41 }
0x1372   :  { %v1850_v47 = vsub.f32 %v1836_v57, %v1848_v46  ;;  %v1851_v49 = vmul.f32 %v1849_v45, %v1849_v45 }
0x1374   :  { %v1853_v50 = vsel %vm61_vm0, %v1851_v49, 0.0  ;;  %v1852_v51 = vmul.f32 %v1850_v47, %v1850_v47 }
0x1375   :  { %1854 = vadd.xlane.f32.xlu1 %v1853_v50 }
0x1376   :  { %v1856_v52 = vsel %vm61_vm0, %v1852_v51, 0.0 }
0x1377   :  { %1857 = vadd.xlane.f32.xlu0 %v1856_v52 }
0x1402   :  { %v1855_v56 = vpop.xlane.xlu1 %1854 }
0x1403   :  { %v1859_v60 = vmul.f32 0.03125, %v1855_v56 }
0x1404   :  { %v1858_v61 = vpop.xlane.xlu0 %1857 }
0x1405   :  { %v1861_v62 = vadd.f32 1e-12, %v1859_v60  ;;  %v1860_v63 = vmul.f32 0.03125, %v1858_v61 }
0x1407   :  { %2572 = vrsqrt.f32 %v1861_v62  ;;  %v1862_v0 = vadd.f32 1e-12, %v1860_v63 }
0x1409   :  { %2574 = vrsqrt.f32 %v1862_v0 }
0x1411   :  { %v2573_v1 = vpop.eup %2572 }
0x1412   :  { %v1865_v2 = vmul.f32 %v2573_v1, %v1849_v45 }
0x1413   :  { %v2575_v3 = vpop.eup %2574 }
0x1414   :  { %v1866_v5 = vmul.f32 %v2575_v3, %v1850_v47  ;;  %v1873_v6 = vmul.f32 %v2143_v4, %v1865_v2 }
0x1416   :  { %v1874_v7 = vmul.f32 %v2143_v4, %v1866_v5  ;;  %v1881_v10 = vadd.f32 %v2144_v8, %v1873_v6 }
0x1418   :  { %v1882_v9 = vadd.f32 %v2144_v8, %v1874_v7 }
0x141a   :  { %v1884_v11 = vrot.slane %v1882_v9, 7 }
0x141c   :  { %v1887_v12 = vsel %vm1886_vm4, %v1881_v10, %v1884_v11 }
0x141d   :  { %v1888_v13 = vpack.c.bf16 %v1887_v12, %v1887_v12 }
0x141f   :  { %2386 = vmatmul.mubr.msk.bf16.vlgmr.msra.gmra.mrb[24].mxu1 %vm61_vm0, %v1888_v13 }
0x1420   :  { %2393 = vmatprep.mubr.msk.bf16.mxu1 %vm2579_vm1, %v2578_v15  ;;  %2390 = vmatpush3.bf16.msra.mxu1 %v2514_v14 }
0x1421   :  { %2391 = vmatprep.subr.bf16.mxu1 %v2578_v15  ;;  %v2149_v15 = vld [vmem:[%s3070_s16] ss:$0 sm:$0xff] }
0x1424   :  { %2392 = vmatpush3.bf16.msra.mxu1 %v2515_v16 }
0x14f2   :  { %v1949_v18 = vpop.f32.mrb[24].mxu1 }
0x14f3   :  { %v1950_v19 = vadd.f32 %v2145_v17, %v1949_v18  ;;  %v2387_v20 = vpop.f32.mrb[25].mxu1 }
0x14f4   :  { %v1952_v21 = vpop.f32.mrb[26].mxu1 }
0x14f5   :  { %2576 = vtanh.f32 %v1950_v19  ;;  %v2388_v22 = vpop.f32.mrb[27].mxu1 }
0x14ff   :  { %v2577_v48 = vpop.eup %2576 }
0x1500   :  { %v1956_v23 = vpack.c.bf16 %v2577_v48, %v2577_v48 }
0x1502   :  { %2394 = vmatmul.mubr.msk.bf16.vlgmr.msra.gmra.mrb[28].mxu1 %vm61_vm0, %v1956_v23 }
0x15d5   :  { %v2017_v31 = vpop.f32.mrb[28].mxu1 }
0x15d6   :  { %v2018_v32 = vadd.f32 %v2149_v15, %v2017_v31  ;;  %v2395_v24 = vpop.f32.mrb[29].mxu1 }
0x15d7   :  { %v2020_v25 = vpop.f32.mrb[30].mxu1 }
0x15d8   :  { %2023 = vst [vmem:[%s3071_s17] sm:$0x3] %v2018_v32  ;;  %v2396_v26 = vpop.f32.mrb[31].mxu1 }

</bundles_post_ra>
